<compile_context>
chip_gen: v7x
topology: tpu7x:2x2x1
jax: 0.10.0
libtpu: 0.0.40
codegen_flags: <defaults>
</compile_context>

<pallas_src>
import functools

import jax
import jax.numpy as jnp
import numpy as np
from jax import lax
from jax.experimental import pallas as pl
from jax.experimental.pallas import tpu as pltpu

BN_EPS = 1e-3


def _conv_bn_relu_kernel(x_ref, w_ref, scale_ref, shift_ref, o_ref, *, K, H_out, W_out):
    # x_ref:     (1, Hp, Wp, Cin)       zero-padded NHWC image of one batch item
    # w_ref:     (K*K, Cin, TCO)        conv weight, one (in, out) matmul per tap
    # scale_ref: (1, TCO)               gamma / sqrt(var + eps)
    # shift_ref: (1, TCO)               beta - mean * scale
    # o_ref:     (1, H_out*W_out, TCO)  lane-dense output tile (channels on lanes)
    cin = x_ref.shape[-1]
    tco = o_ref.shape[-1]

    acc = jnp.zeros((H_out * W_out, tco), jnp.float32)
    # Static unrolled loop over the K*K taps: each tap is a shifted window of the
    # padded image matmul'd against its (Cin, TCO) weight slice on the MXU.
    for dy in range(K):
        for dx in range(K):
            win = x_ref[0, pl.ds(dy, H_out), pl.ds(dx, W_out), :]      # (H_out, W_out, Cin)
            win = win.reshape(H_out * W_out, cin)
            acc = acc + jnp.dot(win, w_ref[dy * K + dx],
                                preferred_element_type=jnp.float32)

    y = acc * scale_ref[...] + shift_ref[...]     # eval-mode BatchNorm2d (folded affine)
    y = jnp.maximum(y, 0.0)                       # ReLU
    o_ref[...] = y.reshape(1, H_out * W_out, tco).astype(o_ref.dtype)


def prepare_params(conv_w, bn_gamma, bn_beta, bn_mean, bn_var):
    """Once-per-model weight preprocessing (hoisted out of the forward path)."""
    C_out, C_in, K, K2 = conv_w.shape
    assert K == K2, "square kernels only"
    # (C_out, C_in, K, K) -> (K*K, C_in, C_out): one (in, out) matmul weight per tap.
    w_taps = jnp.transpose(conv_w, (2, 3, 1, 0)).reshape(K * K, C_in, C_out)
    scale = (bn_gamma / jnp.sqrt(bn_var + BN_EPS)).reshape(1, C_out)
    shift = bn_beta.reshape(1, C_out) - bn_mean.reshape(1, C_out) * scale
    return {"w_taps": w_taps, "scale": scale, "shift": shift,
            "K": K, "C_in": C_in, "C_out": C_out}


def basic_conv2d_forward(x, prepared, *, padding=0):
    """x: (N, C_in, H, W) NCHW -> (N, C_out, H_out, W_out) NCHW, stride 1."""
    # TODO(synk): stride > 1 and dilation are not implemented (stride=1 only).
    K, C_in, C_out = prepared["K"], prepared["C_in"], prepared["C_out"]
    N, C, H, W = x.shape
    assert C == C_in
    H_out = H + 2 * padding - K + 1
    W_out = W + 2 * padding - K + 1
    assert H_out > 0 and W_out > 0

    # NCHW -> NHWC (channels on the lane axis) and zero-pad the spatial dims.
    x_nhwc = jnp.transpose(x, (0, 2, 3, 1))
    if padding:
        x_nhwc = jnp.pad(x_nhwc, ((0, 0), (padding, padding), (padding, padding), (0, 0)))
    Hp, Wp = H + 2 * padding, W + 2 * padding

    # Lane-dense output-channel tiling: 128-wide blocks when possible.
    TCO = 128 if C_out % 128 == 0 else C_out
    n_co = C_out // TCO

    kernel = functools.partial(_conv_bn_relu_kernel, K=K, H_out=H_out, W_out=W_out)

    out = pl.pallas_call(
        kernel,
        out_shape=jax.ShapeDtypeStruct((N, H_out * W_out, C_out), x.dtype),
        grid=(N, n_co),
        in_specs=[
            pl.BlockSpec((1, Hp, Wp, C_in), lambda n, co: (n, 0, 0, 0)),
            pl.BlockSpec((K * K, C_in, TCO), lambda n, co: (0, 0, co)),
            pl.BlockSpec((1, TCO), lambda n, co: (0, co)),
            pl.BlockSpec((1, TCO), lambda n, co: (0, co)),
        ],
        out_specs=pl.BlockSpec((1, H_out * W_out, TCO), lambda n, co: (n, 0, co)),
        compiler_params=pltpu.CompilerParams(
            dimension_semantics=("parallel", "parallel")),
    )(x_nhwc, prepared["w_taps"], prepared["scale"], prepared["shift"])

    # (N, H_out*W_out, C_out) -> NCHW to match the PyTorch module's output layout.
    return jnp.transpose(out.reshape(N, H_out, W_out, C_out), (0, 3, 1, 2))


def ref_forward(x, conv_w, bn_gamma, bn_beta, bn_mean, bn_var, *, padding=0):
    """Pure-JAX reference mirroring the PyTorch forward (BN in eval mode)."""
    y = lax.conv_general_dilated(
        x, conv_w, window_strides=(1, 1),
        padding=[(padding, padding), (padding, padding)],
        dimension_numbers=("NCHW", "OIHW", "NCHW"))
    inv = 1.0 / jnp.sqrt(bn_var + BN_EPS)
    y = (y - bn_mean[None, :, None, None]) * inv[None, :, None, None]
    y = y * bn_gamma[None, :, None, None] + bn_beta[None, :, None, None]
    return jnp.maximum(y, 0.0)


def _make_params(key, C_in, C_out, K):
    ks = jax.random.split(key, 5)
    return {
        # nn.Conv2d(C_in, C_out, kernel_size=K, bias=False) -> weight (C_out, C_in, K, K)
        "conv_w":   jax.random.normal(ks[0], (C_out, C_in, K, K), jnp.float32)
                    / np.sqrt(C_in * K * K),
        # nn.BatchNorm2d(C_out, eps=0.001) learnable params + running stats (eval mode)
        "bn_gamma": jax.random.uniform(ks[1], (C_out,), jnp.float32, minval=0.5, maxval=1.5),
        "bn_beta":  jax.random.normal(ks[2], (C_out,), jnp.float32) * 0.1,
        "bn_mean":  jax.random.normal(ks[3], (C_out,), jnp.float32) * 0.1,
        "bn_var":   jax.random.uniform(ks[4], (C_out,), jnp.float32, minval=0.5, maxval=1.5),
    }


def _run_case(key, N, C_in, H, W, C_out, K, padding):
    kx, kp = jax.random.split(key)
    x = jax.random.normal(kx, (N, C_in, H, W), jnp.float32)
    p = _make_params(kp, C_in, C_out, K)

    prepared = prepare_params(p["conv_w"], p["bn_gamma"], p["bn_beta"],
                              p["bn_mean"], p["bn_var"])
    out = jax.block_until_ready(basic_conv2d_forward(x, prepared, padding=padding))

    H_out = H + 2 * padding - K + 1
    W_out = W + 2 * padding - K + 1
    assert out.shape == (N, C_out, H_out, W_out)

    ref = ref_forward(x, p["conv_w"], p["bn_gamma"], p["bn_beta"],
                      p["bn_mean"], p["bn_var"], padding=padding)
    np.testing.assert_allclose(np.asarray(out), np.asarray(ref), rtol=2e-2, atol=2e-2)


if __name__ == "__main__":
    key = jax.random.PRNGKey(0)
    k1, k2 = jax.random.split(key)

    # 3x3 "same" conv, GoogLeNet-style BasicConv2d(32, 128, kernel_size=3, padding=1).
    _run_case(k1, N=2, C_in=32, H=16, W=16, C_out=128, K=3, padding=1)
    # 1x1 conv, as used in the Inception aux head: BasicConv2d(64, 128, kernel_size=1).
    _run_case(k2, N=2, C_in=64, H=8, W=8, C_out=128, K=1, padding=0)

    print("KERNEL_OK")
</pallas_src>

<mosaic_0001>
module attributes {stable_mosaic.version = 11 : i64} {
  func.func @_conv_bn_relu_kernel(%arg0: i32, %arg1: i32, %arg2: memref<1x18x18x32xf32, #tpu.memory_space<vmem>>, %arg3: memref<9x32x128xf32, #tpu.memory_space<vmem>>, %arg4: memref<1x128xf32, #tpu.memory_space<vmem>>, %arg5: memref<1x128xf32, #tpu.memory_space<vmem>>, %arg6: memref<1x256x128xf32, #tpu.memory_space<vmem>>) attributes {dimension_semantics = [#tpu.dimension_semantics<parallel>, #tpu.dimension_semantics<parallel>], iteration_bounds = array<i64: 2, 1>, scalar_prefetch = 0 : i64, scratch_operands = 0 : i64, tpu.core_type = #tpu.core_type<tc>, window_params = [{transform_indices = @transform_0, window_bounds = array<i64: 1, 18, 18, 32>}, {transform_indices = @transform_1, window_bounds = array<i64: 9, 32, 128>}, {transform_indices = @transform_2, window_bounds = array<i64: 1, 128>}, {transform_indices = @transform_3, window_bounds = array<i64: 1, 128>}, {transform_indices = @transform_4, window_bounds = array<i64: 1, 256, 128>}]} {
    %cst = arith.constant 0.000000e+00 : f32
    %0 = vector.broadcast %cst : f32 to vector<256x128xf32>
    %c0 = arith.constant 0 : index
    %c0_0 = arith.constant 0 : index
    %c0_1 = arith.constant 0 : index
    %c0_2 = arith.constant 0 : index
    %1 = vector.load %arg2[%c0, %c0_0, %c0_1, %c0_2] : memref<1x18x18x32xf32, #tpu.memory_space<vmem>>, vector<1x16x16x32xf32>
    %2 = vector.shape_cast %1 : vector<1x16x16x32xf32> to vector<16x16x32xf32>
    %3 = vector.shape_cast %2 : vector<16x16x32xf32> to vector<256x32xf32>
    %c0_3 = arith.constant 0 : index
    %c0_4 = arith.constant 0 : index
    %c0_5 = arith.constant 0 : index
    %4 = vector.load %arg3[%c0_3, %c0_4, %c0_5] : memref<9x32x128xf32, #tpu.memory_space<vmem>>, vector<1x32x128xf32>
    %5 = vector.shape_cast %4 : vector<1x32x128xf32> to vector<32x128xf32>
    %cst_6 = arith.constant dense<0.000000e+00> : vector<256x128xf32>
    %6 = tpu.matmul %3, %5, %cst_6 {dimension_numbers = #tpu.dot_dimension_numbers<[1], [0], [0], [1], [0, 0, 1, 1], [], []>} : vector<256x32xf32>, vector<32x128xf32>, vector<256x128xf32> -> vector<256x128xf32>
    %7 = arith.addf %0, %6 : vector<256x128xf32>
    %c0_7 = arith.constant 0 : index
    %c0_8 = arith.constant 0 : index
    %c1 = arith.constant 1 : index
    %c0_9 = arith.constant 0 : index
    %8 = vector.load %arg2[%c0_7, %c0_8, %c1, %c0_9] : memref<1x18x18x32xf32, #tpu.memory_space<vmem>>, vector<1x16x16x32xf32>
    %9 = vector.shape_cast %8 : vector<1x16x16x32xf32> to vector<16x16x32xf32>
    %10 = vector.shape_cast %9 : vector<16x16x32xf32> to vector<256x32xf32>
    %c1_10 = arith.constant 1 : index
    %c0_11 = arith.constant 0 : index
    %c0_12 = arith.constant 0 : index
    %11 = vector.load %arg3[%c1_10, %c0_11, %c0_12] : memref<9x32x128xf32, #tpu.memory_space<vmem>>, vector<1x32x128xf32>
    %12 = vector.shape_cast %11 : vector<1x32x128xf32> to vector<32x128xf32>
    %cst_13 = arith.constant dense<0.000000e+00> : vector<256x128xf32>
    %13 = tpu.matmul %10, %12, %cst_13 {dimension_numbers = #tpu.dot_dimension_numbers<[1], [0], [0], [1], [0, 0, 1, 1], [], []>} : vector<256x32xf32>, vector<32x128xf32>, vector<256x128xf32> -> vector<256x128xf32>
    %14 = arith.addf %7, %13 : vector<256x128xf32>
    %c0_14 = arith.constant 0 : index
    %c0_15 = arith.constant 0 : index
    %c2 = arith.constant 2 : index
    %c0_16 = arith.constant 0 : index
    %15 = vector.load %arg2[%c0_14, %c0_15, %c2, %c0_16] : memref<1x18x18x32xf32, #tpu.memory_space<vmem>>, vector<1x16x16x32xf32>
    %16 = vector.shape_cast %15 : vector<1x16x16x32xf32> to vector<16x16x32xf32>
    %17 = vector.shape_cast %16 : vector<16x16x32xf32> to vector<256x32xf32>
    %c2_17 = arith.constant 2 : index
    %c0_18 = arith.constant 0 : index
    %c0_19 = arith.constant 0 : index
    %18 = vector.load %arg3[%c2_17, %c0_18, %c0_19] : memref<9x32x128xf32, #tpu.memory_space<vmem>>, vector<1x32x128xf32>
    %19 = vector.shape_cast %18 : vector<1x32x128xf32> to vector<32x128xf32>
    %cst_20 = arith.constant dense<0.000000e+00> : vector<256x128xf32>
    %20 = tpu.matmul %17, %19, %cst_20 {dimension_numbers = #tpu.dot_dimension_numbers<[1], [0], [0], [1], [0, 0, 1, 1], [], []>} : vector<256x32xf32>, vector<32x128xf32>, vector<256x128xf32> -> vector<256x128xf32>
    %21 = arith.addf %14, %20 : vector<256x128xf32>
    %c0_21 = arith.constant 0 : index
    %c1_22 = arith.constant 1 : index
    %c0_23 = arith.constant 0 : index
    %c0_24 = arith.constant 0 : index
    %22 = vector.load %arg2[%c0_21, %c1_22, %c0_23, %c0_24] : memref<1x18x18x32xf32, #tpu.memory_space<vmem>>, vector<1x16x16x32xf32>
    %23 = vector.shape_cast %22 : vector<1x16x16x32xf32> to vector<16x16x32xf32>
    %24 = vector.shape_cast %23 : vector<16x16x32xf32> to vector<256x32xf32>
    %c3 = arith.constant 3 : index
    %c0_25 = arith.constant 0 : index
    %c0_26 = arith.constant 0 : index
    %25 = vector.load %arg3[%c3, %c0_25, %c0_26] : memref<9x32x128xf32, #tpu.memory_space<vmem>>, vector<1x32x128xf32>
    %26 = vector.shape_cast %25 : vector<1x32x128xf32> to vector<32x128xf32>
    %cst_27 = arith.constant dense<0.000000e+00> : vector<256x128xf32>
    %27 = tpu.matmul %24, %26, %cst_27 {dimension_numbers = #tpu.dot_dimension_numbers<[1], [0], [0], [1], [0, 0, 1, 1], [], []>} : vector<256x32xf32>, vector<32x128xf32>, vector<256x128xf32> -> vector<256x128xf32>
    %28 = arith.addf %21, %27 : vector<256x128xf32>
    %c0_28 = arith.constant 0 : index
    %c1_29 = arith.constant 1 : index
    %c1_30 = arith.constant 1 : index
    %c0_31 = arith.constant 0 : index
    %29 = vector.load %arg2[%c0_28, %c1_29, %c1_30, %c0_31] : memref<1x18x18x32xf32, #tpu.memory_space<vmem>>, vector<1x16x16x32xf32>
    %30 = vector.shape_cast %29 : vector<1x16x16x32xf32> to vector<16x16x32xf32>
    %31 = vector.shape_cast %30 : vector<16x16x32xf32> to vector<256x32xf32>
    %c4 = arith.constant 4 : index
    %c0_32 = arith.constant 0 : index
    %c0_33 = arith.constant 0 : index
    %32 = vector.load %arg3[%c4, %c0_32, %c0_33] : memref<9x32x128xf32, #tpu.memory_space<vmem>>, vector<1x32x128xf32>
    %33 = vector.shape_cast %32 : vector<1x32x128xf32> to vector<32x128xf32>
    %cst_34 = arith.constant dense<0.000000e+00> : vector<256x128xf32>
    %34 = tpu.matmul %31, %33, %cst_34 {dimension_numbers = #tpu.dot_dimension_numbers<[1], [0], [0], [1], [0, 0, 1, 1], [], []>} : vector<256x32xf32>, vector<32x128xf32>, vector<256x128xf32> -> vector<256x128xf32>
    %35 = arith.addf %28, %34 : vector<256x128xf32>
    %c0_35 = arith.constant 0 : index
    %c1_36 = arith.constant 1 : index
    %c2_37 = arith.constant 2 : index
    %c0_38 = arith.constant 0 : index
    %36 = vector.load %arg2[%c0_35, %c1_36, %c2_37, %c0_38] : memref<1x18x18x32xf32, #tpu.memory_space<vmem>>, vector<1x16x16x32xf32>
    %37 = vector.shape_cast %36 : vector<1x16x16x32xf32> to vector<16x16x32xf32>
    %38 = vector.shape_cast %37 : vector<16x16x32xf32> to vector<256x32xf32>
    %c5 = arith.constant 5 : index
    %c0_39 = arith.constant 0 : index
    %c0_40 = arith.constant 0 : index
    %39 = vector.load %arg3[%c5, %c0_39, %c0_40] : memref<9x32x128xf32, #tpu.memory_space<vmem>>, vector<1x32x128xf32>
    %40 = vector.shape_cast %39 : vector<1x32x128xf32> to vector<32x128xf32>
    %cst_41 = arith.constant dense<0.000000e+00> : vector<256x128xf32>
    %41 = tpu.matmul %38, %40, %cst_41 {dimension_numbers = #tpu.dot_dimension_numbers<[1], [0], [0], [1], [0, 0, 1, 1], [], []>} : vector<256x32xf32>, vector<32x128xf32>, vector<256x128xf32> -> vector<256x128xf32>
    %42 = arith.addf %35, %41 : vector<256x128xf32>
    %c0_42 = arith.constant 0 : index
    %c2_43 = arith.constant 2 : index
    %c0_44 = arith.constant 0 : index
    %c0_45 = arith.constant 0 : index
    %43 = vector.load %arg2[%c0_42, %c2_43, %c0_44, %c0_45] : memref<1x18x18x32xf32, #tpu.memory_space<vmem>>, vector<1x16x16x32xf32>
    %44 = vector.shape_cast %43 : vector<1x16x16x32xf32> to vector<16x16x32xf32>
    %45 = vector.shape_cast %44 : vector<16x16x32xf32> to vector<256x32xf32>
    %c6 = arith.constant 6 : index
    %c0_46 = arith.constant 0 : index
    %c0_47 = arith.constant 0 : index
    %46 = vector.load %arg3[%c6, %c0_46, %c0_47] : memref<9x32x128xf32, #tpu.memory_space<vmem>>, vector<1x32x128xf32>
    %47 = vector.shape_cast %46 : vector<1x32x128xf32> to vector<32x128xf32>
    %cst_48 = arith.constant dense<0.000000e+00> : vector<256x128xf32>
    %48 = tpu.matmul %45, %47, %cst_48 {dimension_numbers = #tpu.dot_dimension_numbers<[1], [0], [0], [1], [0, 0, 1, 1], [], []>} : vector<256x32xf32>, vector<32x128xf32>, vector<256x128xf32> -> vector<256x128xf32>
    %49 = arith.addf %42, %48 : vector<256x128xf32>
    %c0_49 = arith.constant 0 : index
    %c2_50 = arith.constant 2 : index
    %c1_51 = arith.constant 1 : index
    %c0_52 = arith.constant 0 : index
    %50 = vector.load %arg2[%c0_49, %c2_50, %c1_51, %c0_52] : memref<1x18x18x32xf32, #tpu.memory_space<vmem>>, vector<1x16x16x32xf32>
    %51 = vector.shape_cast %50 : vector<1x16x16x32xf32> to vector<16x16x32xf32>
    %52 = vector.shape_cast %51 : vector<16x16x32xf32> to vector<256x32xf32>
    %c7 = arith.constant 7 : index
    %c0_53 = arith.constant 0 : index
    %c0_54 = arith.constant 0 : index
    %53 = vector.load %arg3[%c7, %c0_53, %c0_54] : memref<9x32x128xf32, #tpu.memory_space<vmem>>, vector<1x32x128xf32>
    %54 = vector.shape_cast %53 : vector<1x32x128xf32> to vector<32x128xf32>
    %cst_55 = arith.constant dense<0.000000e+00> : vector<256x128xf32>
    %55 = tpu.matmul %52, %54, %cst_55 {dimension_numbers = #tpu.dot_dimension_numbers<[1], [0], [0], [1], [0, 0, 1, 1], [], []>} : vector<256x32xf32>, vector<32x128xf32>, vector<256x128xf32> -> vector<256x128xf32>
    %56 = arith.addf %49, %55 : vector<256x128xf32>
    %c0_56 = arith.constant 0 : index
    %c2_57 = arith.constant 2 : index
    %c2_58 = arith.constant 2 : index
    %c0_59 = arith.constant 0 : index
    %57 = vector.load %arg2[%c0_56, %c2_57, %c2_58, %c0_59] : memref<1x18x18x32xf32, #tpu.memory_space<vmem>>, vector<1x16x16x32xf32>
    %58 = vector.shape_cast %57 : vector<1x16x16x32xf32> to vector<16x16x32xf32>
    %59 = vector.shape_cast %58 : vector<16x16x32xf32> to vector<256x32xf32>
    %c8 = arith.constant 8 : index
    %c0_60 = arith.constant 0 : index
    %c0_61 = arith.constant 0 : index
    %60 = vector.load %arg3[%c8, %c0_60, %c0_61] : memref<9x32x128xf32, #tpu.memory_space<vmem>>, vector<1x32x128xf32>
    %61 = vector.shape_cast %60 : vector<1x32x128xf32> to vector<32x128xf32>
    %cst_62 = arith.constant dense<0.000000e+00> : vector<256x128xf32>
    %62 = tpu.matmul %59, %61, %cst_62 {dimension_numbers = #tpu.dot_dimension_numbers<[1], [0], [0], [1], [0, 0, 1, 1], [], []>} : vector<256x32xf32>, vector<32x128xf32>, vector<256x128xf32> -> vector<256x128xf32>
    %63 = arith.addf %56, %62 : vector<256x128xf32>
    %c0_63 = arith.constant 0 : index
    %c0_64 = arith.constant 0 : index
    %64 = vector.load %arg4[%c0_63, %c0_64] : memref<1x128xf32, #tpu.memory_space<vmem>>, vector<1x128xf32>
    %65 = vector.broadcast %64 : vector<1x128xf32> to vector<256x128xf32>
    %66 = arith.mulf %63, %65 : vector<256x128xf32>
    %c0_65 = arith.constant 0 : index
    %c0_66 = arith.constant 0 : index
    %67 = vector.load %arg5[%c0_65, %c0_66] : memref<1x128xf32, #tpu.memory_space<vmem>>, vector<1x128xf32>
    %68 = vector.broadcast %67 : vector<1x128xf32> to vector<256x128xf32>
    %69 = arith.addf %66, %68 : vector<256x128xf32>
    %cst_67 = arith.constant 0.000000e+00 : f32
    %70 = vector.broadcast %cst_67 : f32 to vector<256x128xf32>
    %71 = arith.maximumf %69, %70 : vector<256x128xf32>
    %72 = vector.shape_cast %71 : vector<256x128xf32> to vector<1x256x128xf32>
    %c0_68 = arith.constant 0 : index
    %c0_69 = arith.constant 0 : index
    %c0_70 = arith.constant 0 : index
    %73 = vector.load %arg6[%c0_68, %c0_69, %c0_70] : memref<1x256x128xf32, #tpu.memory_space<vmem>>, vector<1x256x128xf32>
    tpu.vector_store %arg6[%c0_68, %c0_69, %c0_70], %72 {strides = array<i32>} : memref<1x256x128xf32, #tpu.memory_space<vmem>>, vector<1x256x128xf32>,
    return
  }
  func.func @transform_0(%arg0: i32, %arg1: i32) -> (i32, i32, i32, i32) {
    %c0_i32 = arith.constant 0 : i32
    %c0_i32_0 = arith.constant 0 : i32
    %c0_i32_1 = arith.constant 0 : i32
    %c0_i32_2 = arith.constant 0 : i32
    return %arg0, %c0_i32, %c0_i32_0, %c0_i32_1 : i32, i32, i32, i32
  }
  func.func @transform_1(%arg0: i32, %arg1: i32) -> (i32, i32, i32) {
    %c0_i32 = arith.constant 0 : i32
    %c0_i32_0 = arith.constant 0 : i32
    %c0_i32_1 = arith.constant 0 : i32
    return %c0_i32, %c0_i32_0, %arg1 : i32, i32, i32
  }
  func.func @transform_2(%arg0: i32, %arg1: i32) -> (i32, i32) {
    %c0_i32 = arith.constant 0 : i32
    %c0_i32_0 = arith.constant 0 : i32
    return %c0_i32, %arg1 : i32, i32
  }
  func.func @transform_3(%arg0: i32, %arg1: i32) -> (i32, i32) {
    %c0_i32 = arith.constant 0 : i32
    %c0_i32_0 = arith.constant 0 : i32
    return %c0_i32, %arg1 : i32, i32
  }
  func.func @transform_4(%arg0: i32, %arg1: i32) -> (i32, i32, i32) {
    %c0_i32 = arith.constant 0 : i32
    %c0_i32_0 = arith.constant 0 : i32
    return %arg0, %c0_i32, %arg1 : i32, i32, i32
  }
}

</mosaic_0001>

<bundles_post_ra>
// kernel: tpu_custom_call.1
= control target key start
LH: loop header
LB: loop body
LE: loop exit
PB: predicated region body
PF: predicated region fallthrough
CT: control target
= control target key end

     0   :  { %9 = vsyncpa [#allocation3], 0  ;;  %s7067_s0 = inlined_call_operand.vmem [shape: f32[2,18,18,32], index: 0, kind: input, shape index: {}]   ;;  %s7068_s1 = inlined_call_operand.vmem [shape: f32[9,32,128], index: 1, kind: input, shape index: {}]   ;;  %s7069_s2 = inlined_call_operand.vmem [shape: f32[1,128], index: 2, kind: input, shape index: {}]   ;;  %s7070_s3 = inlined_call_operand.vmem [shape: f32[1,128], index: 3, kind: input, shape index: {}]   ;;  %s7071_s4 = inlined_call_operand.hbm [shape: f32[2,256,128], index: 4, kind: output, shape index: {}]  }
   0x1   :  { %11 = vsyncpa [#allocation3 + $0x1], 0  ;;  %s5827_s15 = smov 0   ;;  %s5829_s16 = smov 0  }
   0x2   :  { %s5831_s17 = smov 0   ;;  %s5833_s18 = smov 0  }
   0x3   :  { %s5835_s19 = smov 0   ;;  %s5837_s20 = smov 0  }
   0x4 LB: > { %s3971_s21 = sadd.s32 4294967295, %s5797_s20   ;;  %s3972_s22 = sadd.s32 4294967294, %s5797_s20   ;;  %s5797_s20 = sphi %s5837_s20, %s17_s20   ;;  %s5793_s19 = sphi %s5835_s19, %s7201_s19   ;;  %s5789_s18 = sphi %s5833_s18, %s7200_s18   ;;  %s5785_s17 = sphi %s5831_s17, %s7199_s17   ;;  %s5781_s16 = sphi %s5829_s16, %s7198_s16   ;;  %s5777_s15 = sphi %s5827_s15, %s7197_s15  }
   0x5   : > { %s29_s23 = sadd.s32 1, %s5793_s19  ;;  %s142_s24 = sadd.s32 1, %s5785_s17 }
   0x6   : > { %p31_p0 = scmp.ge.s32.totalorder %s29_s23, 2  ;;  %p152_p1 = scmp.ne.s32.totalorder %s5785_s17, %s5781_s16 }
   0x7   : > { %p153_p2 = scmp.eq.s32.totalorder %s3971_s21, 1  ;;  %p158_p3 = scmp.ne.s32.totalorder %s5781_s16, %s5777_s15 }
   0x8   : > { %s7203_s23 = smov (%p31_p0, %s29_s23), 0  ;;  %p159_p5 = scmp.eq.s32.totalorder %s3972_s22, 1 }
   0x9   : > { %p5867_p4 = por %p153_p2, %p152_p1  ;;  %s137_s26 = ssub.s32 %s5793_s19, %s7203_s23 }
   0xa   : > { %p3978_p6 = scmp.ge.s32.totalorder %s5797_s20, 1  ;;  %p140_p7 = scmp.eq.s32.totalorder %s137_s26, 0 }
   0xb   : > { %p5874_p8 = por %p159_p5, %p158_p3  ;;  %p204_p9 = scmp.lt.s32.totalorder %s5797_s20, 3 }
   0xc   : > { %s5880_s28 = scalar_select %p140_p7, %s5785_s17, %s142_s24  }
   0xd   : > { %p205_p10 = pnand %p3978_p6, %p204_p9 }
   0xf   : > { %208 = sbr.rel (%p205_p10) target bundleno = 554 (0x22a), region = 36 }
  0x16   : > { %v3981_v0 = vld [vmem:[%s7068_s1 + $0x20] sm:$0xff]  ;;  %v3982_v1 = vld [vmem:[%s7068_s1 + $0x28] sm:$0xff]  ;;  %p240_p11 = scmp.lt.s32.totalorder %s5789_s18, 1  ;;  %v3983_v5 = vld [vmem:[%s7068_s1 + $0x30] sm:$0xff]  ;;  %vm328_vm0 = vcmask 261120   ;;  %s4500_s9 = sshll.u32 %s5789_s18, 12 }
  0x17   : > { %v4185_v2 = vld [vmem:[%s7068_s1 + $0x80] sm:$0xff]  ;;  %v5329_v3 = vpack.c.bf16 %v3982_v1, %v3981_v0  ;;  %v4186_v4 = vld [vmem:[%s7068_s1 + $0x88] sm:$0xff]  ;;  %v3984_v6 = vld [vmem:[%s7068_s1 + $0x38] sm:$0xff]  ;;  %s7013_s13 = scalar_lea.hbm %s7071_s4, %s4500_s9  ;;  %s5799_s22 = smov [#allocation2]  }
  0x18   : > { %v5901_v7 = vpack.c.bf16 %v4186_v4, %v4185_v2  ;;  %v5333_v8 = vpack.c.bf16 %v3984_v6, %v3983_v5  ;;  %v4187_v9 = vld [vmem:[%s7068_s1 + $0x90] sm:$0xff]  ;;  %v4188_v10 = vld [vmem:[%s7068_s1 + $0x98] sm:$0xff]  ;;  %s241_s29 = scalar_select %p240_p11, %s5789_s18, 1  ;;  %v287_v11 = vld [vmem:[%s7068_s1] sm:$0xff] }
  0x19   : > { %5330 = vmatprep.subr.bf16.mxu1 %v5329_v3  ;;  %v5913_v12 = vpack.c.bf16 %v4188_v10, %v4187_v9  ;;  %v288_v13 = vld [vmem:[%s7068_s1 + $0x8] sm:$0xff]  ;;  %v4253_v14 = vld [vmem:[%s7068_s1 + $0xa0] sm:$0xff]  ;;  %v4255_v18 = vld [vmem:[%s7068_s1 + $0xb0] sm:$0xff]  ;;  %s5723_s24 = sshll.u32 %s5799_s22, 4  ;;  %s5724_s24 = int_to_ptr.vmem [resolvable:$false] %s5723_s24 }
  0x1a   : > { %v4254_v15 = vld [vmem:[%s7068_s1 + $0xa8] sm:$0xff]  ;;  %5362 = vmatprep.subr.bf16.mxu0 %v5901_v7  ;;  %5332 = vmatpush3.bf16.msra.mxu1 %v5329_v3  ;;  %s5661_s12 = smul.u32 432, %s241_s29  ;;  %v5337_v16 = vpack.c.bf16 %v288_v13, %v287_v11  ;;  %v4256_v21 = vld [vmem:[%s7068_s1 + $0xb8] sm:$0xff]  ;;  %v289_v23 = vld [vmem:[%s7068_s1 + $0x10] sm:$0xff]  ;;  %s5725_s26 = scalar_lea.vmem %s5724_s24, 8192 }
  0x1b   : > { %7126 = vst [vmem:[#allocation5_spill] sm:$0xff] %v5913_v12  ;;  %5364 = vmatpush3.bf16.msra.mxu0 %v5901_v7  ;;  %5334 = vmatprep.subr.bf16.mxu1 %v5333_v8  ;;  %v5369_v17 = vpack.c.bf16 %v4254_v15, %v4253_v14  ;;  %v290_v24 = vld [vmem:[%s7068_s1 + $0x18] sm:$0xff]  ;;  %v5373_v26 = vpack.c.bf16 %v4256_v21, %v4255_v18  ;;  %v4321_v29 = vld [vmem:[%s7068_s1 + $0xc0] sm:$0xff]  ;;  %v4322_v30 = vld [vmem:[%s7068_s1 + $0xc8] sm:$0xff] }
  0x1c   : > { %5366 = vmatprep.subr.bf16.mxu0 %v5913_v12  ;;  %s5930_s21 = scalar_lea.vmem %s7067_s0, %s5661_s12  ;;  %v5341_v28 = vpack.c.bf16 %v290_v24, %v289_v23  ;;  %v4049_v31 = vld [vmem:[%s7068_s1 + $0x40] sm:$0xff]  ;;  %v4050_v32 = vld [vmem:[%s7068_s1 + $0x48] sm:$0xff]  ;;  %v5377_v35 = vpack.c.bf16 %v4322_v30, %v4321_v29  ;;  %v4323_v49 = vld [vmem:[%s7068_s1 + $0xd0] sm:$0xff] }
  0x1d   : > { %v291_v19 = vld [vmem:[%s5930_s21 + $0x1] sm:$0xff]  ;;  %v4153_v20 = vld [vmem:[%s5930_s21 + $0x19] sm:$0xff]  ;;  %v292_v22 = vld [vmem:[%s5930_s21 + $0x9] sm:$0xff]  ;;  %v5978_v36 = vpack.c.bf16 %v4050_v32, %v4049_v31 }
  0x1e   : > { %5336 = vmatpush3.bf16.msra.mxu1 %v5333_v8  ;;  %4833 = vmatprep.mubr.msk.f32.mxu1 %vm328_vm0, %v291_v19  ;;  %v4154_v25 = vld [vmem:[%s5930_s21 + $0x21] sm:$0xff]  ;;  %v5953_v27 = vld [vmem:[%s5930_s21 + $0x31] sm:$0xff]  ;;  %v5970_v33 = vld [vmem:[%s5930_s21 + $0x39] sm:$0xff] }
  0x1f   : > { %5368 = vmatpush3.bf16.msra.mxu0 %v5913_v12  ;;  %5057 = vmatprep.mubr.msk.f32.mxu0 %vm328_vm0, %v4153_v20  ;;  %v5975_v34 = vld [vmem:[%s5930_s21 + $0x49] sm:$0xff]  ;;  %v5987_v37 = vld [vmem:[%s5930_s21 + $0x51] sm:$0xff]  ;;  %v5990_v38 = vld [vmem:[%s5930_s21 + $0x61] sm:$0xff] }
  0x20   : > { %5338 = vmatprep.subr.bf16.mxu1 %v5337_v16  ;;  %5370 = vmatprep.subr.bf16.mxu0 %v5369_v17  ;;  %v6002_v39 = vld [vmem:[%s5930_s21 + $0x69] sm:$0xff]  ;;  %v6005_v40 = vld [vmem:[%s5930_s21 + $0x79] sm:$0xff]  ;;  %v6016_v41 = vld [vmem:[%s5930_s21 + $0x81] sm:$0xff] }
  0x21   : > { %4834 = vmatmul.mubr.msk.f32.vlgmr.msra.gmra.mrb[0].mxu1 %vm328_vm0, %v292_v22  ;;  %v6019_v42 = vld [vmem:[%s5930_s21 + $0x91] sm:$0xff]  ;;  %v6030_v43 = vld [vmem:[%s5930_s21 + $0x99] sm:$0xff]  ;;  %v6033_v44 = vld [vmem:[%s5930_s21 + $0xa9] sm:$0xff] }
  0x22   : > { %5058 = vmatmul.mubr.msk.f32.vlgmr.msra.gmra.mrb[0].mxu0 %vm328_vm0, %v4154_v25  ;;  %5340 = vmatpush3.bf16.msra.mxu1 %v5337_v16  ;;  %v6044_v45 = vld [vmem:[%s5930_s21 + $0xb1] sm:$0xff]  ;;  %v6047_v46 = vld [vmem:[%s5930_s21 + $0xc1] sm:$0xff]  ;;  %v6058_v47 = vld [vmem:[%s5930_s21 + $0xc9] sm:$0xff] }
  0x23   : > { %5372 = vmatpush3.bf16.msra.mxu0 %v5369_v17  ;;  %4836 = vmatprep.mubr.msk.f32.mxu1 %vm328_vm0, %v4153_v20  ;;  %7127 = vst [vmem:[#allocation6_spill] sm:$0xff] %v6058_v47  ;;  %v6061_v48 = vld [vmem:[%s5930_s21 + $0x1a] sm:$0xff]  ;;  %v6078_v51 = vld [vmem:[%s5930_s21 + $0x22] sm:$0xff]  ;;  %v6084_v53 = vld [vmem:[%s5930_s21 + $0x32] sm:$0xff] }
  0x24   : > { %5060 = vmatprep.mubr.msk.f32.mxu0 %vm328_vm0, %v5953_v27  ;;  %5374 = vmatprep.subr.bf16.mxu0 %v5373_v26  ;;  %v4324_v50 = vld [vmem:[%s7068_s1 + $0xd8] sm:$0xff]  ;;  %v4389_v55 = vld [vmem:[%s7068_s1 + $0xe0] sm:$0xff]  ;;  %v4390_v56 = vld [vmem:[%s7068_s1 + $0xe8] sm:$0xff] }
  0x25   : > { %4837 = vmatmul.mubr.msk.f32.gmra.mrb[2].mxu1 %vm328_vm0, %v4154_v25  ;;  %5342 = vmatprep.subr.bf16.mxu1 %v5341_v28  ;;  %v6081_v52 = vld [vmem:[%s5930_s21 + $0xd9] sm:$0xff]  ;;  %v5381_v54 = vpack.c.bf16 %v4324_v50, %v4323_v49  ;;  %v6099_v57 = vld [vmem:[%s5930_s21 + $0xe1] sm:$0xff]  ;;  %v6107_v59 = vld [vmem:[%s5930_s21 + $0xf1] sm:$0xff]  ;;  %v6112_v61 = vpack.c.bf16 %v4390_v56, %v4389_v55 }
  0x26   : > { %5061 = vmatmul.mubr.msk.f32.gmra.mrb[2].mxu0 %vm328_vm0, %v5970_v33  ;;  %4839 = vmatprep.mubr.msk.f32.mxu1 %vm328_vm0, %v5953_v27  ;;  %7128 = vst [vmem:[#allocation7_spill] sm:$0xff] %v6081_v52  ;;  %7129 = vst [vmem:[#allocation8_spill] sm:$0xff] %v6099_v57  ;;  %v6104_v58 = vld [vmem:[%s5930_s21 + $0x3a] sm:$0xff]  ;;  %v6110_v60 = vld [vmem:[%s5930_s21 + $0x4a] sm:$0xff] }
  0x27   : > { %5063 = vmatprep.mubr.msk.f32.mxu0 %vm328_vm0, %v5975_v34  ;;  %5376 = vmatpush3.bf16.msra.mxu0 %v5373_v26  ;;  %7130 = vst [vmem:[#allocation9_spill] sm:$0xff] %v6107_v59  ;;  %v6121_v62 = vld [vmem:[%s5930_s21 + $0xf9] sm:$0xff]  ;;  %v6129_v0 = vld [vmem:[%s5930_s21 + $0x109] sm:$0xff]  ;;  %v6142_v2 = vld [vmem:[%s5930_s21 + $0x111] sm:$0xff] }
  0x28   : > { %5378 = vmatprep.subr.bf16.mxu0 %v5377_v35  ;;  %5344 = vmatpush3.bf16.msra.mxu1 %v5341_v28  ;;  %7131 = vst [vmem:[#allocation10_spill] sm:$0xff] %v6121_v62  ;;  %v6126_v63 = vld [vmem:[%s5930_s21 + $0x52] sm:$0xff]  ;;  %7132 = vst [vmem:[#allocation11_spill] sm:$0xff] %v6129_v0  ;;  %v6132_v1 = vld [vmem:[%s5930_s21 + $0x62] sm:$0xff] }
  0x29   : > { %4840 = vmatmul.mubr.msk.f32.gmra.mrb[4].mxu1 %vm328_vm0, %v5970_v33  ;;  %5346 = vmatprep.subr.bf16.mxu1 %v5978_v36  ;;  %7133 = vst [vmem:[#allocation12_spill] sm:$0xff] %v6142_v2  ;;  %v6147_v3 = vld [vmem:[%s5930_s21 + $0x6a] sm:$0xff]  ;;  %v6150_v4 = vld [vmem:[%s5930_s21 + $0x121] sm:$0xff]  ;;  %v6170_v9 = vld [vmem:[%s5930_s21 + $0x139] sm:$0xff] }
  0x2a   : > { %5064 = vmatmul.mubr.msk.f32.gmra.mrb[4].mxu0 %vm328_vm0, %v5987_v37  ;;  %4842 = vmatprep.mubr.msk.f32.mxu1 %vm328_vm0, %v5975_v34  ;;  %7134 = vst [vmem:[#allocation13_spill] sm:$0xff] %v6150_v4  ;;  %v6153_v5 = vld [vmem:[%s5930_s21 + $0x7a] sm:$0xff]  ;;  %v6162_v6 = vld [vmem:[%s5930_s21 + $0x129] sm:$0xff]  ;;  %7136 = vst [vmem:[#allocation15_spill] sm:$0xff] %v6170_v9 }
  0x2b   : > { %5066 = vmatprep.mubr.msk.f32.mxu0 %vm328_vm0, %v5990_v38  ;;  %7135 = vst [vmem:[#allocation14_spill] sm:$0xff] %v6162_v6  ;;  %v6167_v8 = vld [vmem:[%s5930_s21 + $0x82] sm:$0xff]  ;;  %v6173_v10 = vld [vmem:[%s5930_s21 + $0x92] sm:$0xff]  ;;  %v6187_v13 = vld [vmem:[%s5930_s21 + $0x9a] sm:$0xff] }
  0x2c   : > { %v6182_v11 = vld [vmem:[%s5930_s21 + $0x141] sm:$0xff]  ;;  %v6190_v14 = vld [vmem:[%s5930_s21 + $0x151] sm:$0xff]  ;;  %v6202_v16 = vld [vmem:[%s5930_s21 + $0x159] sm:$0xff] }
  0x2d   : > { %4843 = vmatmul.mubr.msk.f32.gmra.mrb[6].mxu1 %vm328_vm0, %v5987_v37  ;;  %7137 = vst [vmem:[#allocation16_spill] sm:$0xff] %v6182_v11  ;;  %7138 = vst [vmem:[#allocation17_spill] sm:$0xff] %v6190_v14  ;;  %v6193_v15 = vld [vmem:[%s5930_s21 + $0xaa] sm:$0xff]  ;;  %v6207_v17 = vld [vmem:[%s5930_s21 + $0xb2] sm:$0xff] }
  0x2e   : > { %5067 = vmatmul.mubr.msk.f32.gmra.mrb[6].mxu0 %vm328_vm0, %v6002_v39  ;;  %4845 = vmatprep.mubr.msk.f32.mxu1 %vm328_vm0, %v5990_v38  ;;  %7139 = vst [vmem:[#allocation18_spill] sm:$0xff] %v6202_v16  ;;  %v6210_v18 = vld [vmem:[%s5930_s21 + $0x169] sm:$0xff]  ;;  %v6222_v20 = vld [vmem:[%s5930_s21 + $0x171] sm:$0xff]  ;;  %v255_v22 = vld [vmem:[%s5930_s21] sm:$0xff] }
  0x2f   : > { %5069 = vmatprep.mubr.msk.f32.mxu0 %vm328_vm0, %v6005_v40  ;;  %7140 = vst [vmem:[#allocation19_spill] sm:$0xff] %v6210_v18  ;;  %v6213_v19 = vld [vmem:[%s5930_s21 + $0xc2] sm:$0xff]  ;;  %7141 = vst [vmem:[#allocation20_spill] sm:$0xff] %v6222_v20  ;;  %v6227_v21 = vld [vmem:[%s5930_s21 + $0xca] sm:$0xff] }
  0x30   : > { %v6231_v23 = vld [vmem:[%s5930_s21 + $0xda] sm:$0xff]  ;;  %v4051_v24 = vld [vmem:[%s7068_s1 + $0x50] sm:$0xff]  ;;  %v256_v26 = vld [vmem:[%s5930_s21 + $0x8] sm:$0xff] }
  0x31   : > { %4846 = vmatmul.mubr.msk.f32.gmra.mrb[8].mxu1 %vm328_vm0, %v6002_v39  ;;  %v4052_v25 = vld [vmem:[%s7068_s1 + $0x58] sm:$0xff]  ;;  %v6248_v28 = vld [vmem:[%s5930_s21 + $0xe2] sm:$0xff]  ;;  %v6280_v55 = vld [vmem:[%s5930_s21 + $0x10a] sm:$0xff] }
  0x32   : > { %5070 = vmatmul.mubr.msk.f32.gmra.mrb[8].mxu0 %vm328_vm0, %v6016_v41  ;;  %4848 = vmatprep.mubr.msk.f32.mxu1 %vm328_vm0, %v6005_v40  ;;  %v6251_v29 = vld [vmem:[%s5930_s21 + $0x18] sm:$0xff]  ;;  %v5349_v31 = vpack.c.bf16 %v4052_v25, %v4051_v24  ;;  %v4117_v32 = vld [vmem:[%s7068_s1 + $0x60] sm:$0xff]  ;;  %v6299_v24 = vld [vmem:[%s5930_s21 + $0x48] sm:$0xff] }
  0x33   : > { %5072 = vmatprep.mubr.msk.f32.mxu0 %vm328_vm0, %v6019_v42  ;;  %7142 = vst [vmem:[#allocation21_spill] sm:$0xff] %v6251_v29  ;;  %v6254_v30 = vld [vmem:[%s5930_s21 + $0xf2] sm:$0xff]  ;;  %v6267_v49 = vld [vmem:[%s5930_s21 + $0x20] sm:$0xff]  ;;  %7145 = vst [vmem:[#allocation24_spill] sm:$0xff] %v6299_v24 }
  0x34   : > { %7143 = vst [vmem:[#allocation22_spill] sm:$0xff] %v6267_v49  ;;  %v6274_v50 = vld [vmem:[%s5930_s21 + $0xfa] sm:$0xff]  ;;  %v6302_v25 = vld [vmem:[%s5930_s21 + $0x122] sm:$0xff]  ;;  %v6377_v12 = vld [vmem:[%s5930_s21 + $0x172] sm:$0xff] }
  0x35   : > { %4849 = vmatmul.mubr.msk.f32.gmra.mrb[10].mxu1 %vm328_vm0, %v6016_v41  ;;  %7153 = vst [vmem:[#allocation32_spill] sm:$0xff] %v6377_v12 }
  0x36   : > { %5073 = vmatmul.mubr.msk.f32.gmra.mrb[10].mxu0 %vm328_vm0, %v6030_v43  ;;  %4851 = vmatprep.mubr.msk.f32.mxu1 %vm328_vm0, %v6019_v42 }
  0x37   : > { %5075 = vmatprep.mubr.msk.f32.mxu0 %vm328_vm0, %v6033_v44 }
  0x39   : > { %4852 = vmatmul.mubr.msk.f32.gmra.mrb[12].mxu1 %vm328_vm0, %v6030_v43 }
  0x3a   : > { %5076 = vmatmul.mubr.msk.f32.gmra.mrb[12].mxu0 %vm328_vm0, %v6044_v45  ;;  %4854 = vmatprep.mubr.msk.f32.mxu1 %vm328_vm0, %v6033_v44 }
  0x3b   : > { %5078 = vmatprep.mubr.msk.f32.mxu0 %vm328_vm0, %v6047_v46 }
  0x3d   : > { %4855 = vmatmul.mubr.msk.f32.gmra.mrb[14].mxu1 %vm328_vm0, %v6044_v45 }
  0x3e   : > { %5079 = vmatmul.mubr.msk.f32.gmra.mrb[14].mxu0 %vm328_vm0, %v6058_v47  ;;  %4857 = vmatprep.mubr.msk.f32.mxu1 %vm328_vm0, %v6047_v46 }
  0x3f   : > { %5113 = vmatprep.mubr.msk.f32.mxu0 %vm328_vm0, %v6061_v48 }
  0x41   : > { %4858 = vmatmul.mubr.msk.f32.gmra.mrb[16].mxu1 %vm328_vm0, %v6058_v47  ;;  %v4458_v47 = vld [vmem:[%s7068_s1 + $0x108] sm:$0xff] }
  0x42   : > { %5114 = vmatmul.mubr.msk.f32.vlgmr.msra.gmra.mrb[0].mxu0 %vm328_vm0, %v6078_v51  ;;  %4860 = vmatprep.mubr.msk.f32.mxu1 %vm328_vm0, %v6081_v52  ;;  %v6420_v52 = vld [vmem:[%s5930_s21 + $0xd8] sm:$0xff] }
  0x43   : > { %5380 = vmatpush3.bf16.msra.mxu0 %v5377_v35  ;;  %5116 = vmatprep.mubr.msk.f32.mxu0 %vm328_vm0, %v6084_v53  ;;  %v4118_v35 = vld [vmem:[%s7068_s1 + $0x68] sm:$0xff]  ;;  %7160 = vst [vmem:[#allocation39_spill] sm:$0xff] %v6420_v52 }
  0x44   : > { %5382 = vmatprep.subr.bf16.mxu0 %v5381_v54  ;;  %v6282_v56 = vpack.c.bf16 %v4118_v35, %v4117_v32  ;;  %v6320_v32 = vld [vmem:[%s5930_s21 + $0x60] sm:$0xff] }
  0x45   : > { %4861 = vmatmul.mubr.msk.f32.gmra.mrb[18].mxu1 %vm328_vm0, %v6099_v57  ;;  %7146 = vst [vmem:[#allocation25_spill] sm:$0xff] %v6320_v32  ;;  %v6323_v35 = vld [vmem:[%s5930_s21 + $0x13a] sm:$0xff]  ;;  %v4391_v57 = vld [vmem:[%s7068_s1 + $0xf0] sm:$0xff] }
  0x46   : > { %5117 = vmatmul.mubr.msk.f32.gmra.mrb[2].mxu0 %vm328_vm0, %v6104_v58  ;;  %4863 = vmatprep.mubr.msk.f32.mxu1 %vm328_vm0, %v6107_v59  ;;  %v6397_v59 = vld [vmem:[%s5930_s21 + $0x18a] sm:$0xff] }
  0x47   : > { %5119 = vmatprep.mubr.msk.f32.mxu0 %vm328_vm0, %v6110_v60  ;;  %5384 = vmatpush3.bf16.msra.mxu0 %v5381_v54  ;;  %v6277_v54 = vld [vmem:[%s5930_s21 + $0x30] sm:$0xff]  ;;  %7157 = vst [vmem:[#allocation36_spill] sm:$0xff] %v6397_v59 }
  0x48   : > { %5386 = vmatprep.subr.bf16.mxu0 %v6112_v61  ;;  %7144 = vst [vmem:[#allocation23_spill] sm:$0xff] %v6277_v54 }
  0x49   : > { %4864 = vmatmul.mubr.msk.f32.gmra.mrb[20].mxu1 %vm328_vm0, %v6121_v62  ;;  %v6383_v62 = vld [vmem:[%s5930_s21 + $0x182] sm:$0xff] }
  0x4a   : > { %5120 = vmatmul.mubr.msk.f32.gmra.mrb[4].mxu0 %vm328_vm0, %v6126_v63  ;;  %4866 = vmatprep.mubr.msk.f32.mxu1 %vm328_vm0, %v6129_v0  ;;  %v6380_v0 = vld [vmem:[%s5930_s21 + $0xa8] sm:$0xff]  ;;  %7155 = vst [vmem:[#allocation34_spill] sm:$0xff] %v6383_v62 }
  0x4b   : > { %5122 = vmatprep.mubr.msk.f32.mxu0 %vm328_vm0, %v6132_v1  ;;  %7154 = vst [vmem:[#allocation33_spill] sm:$0xff] %v6380_v0 }
  0x4d   : > { %4867 = vmatmul.mubr.msk.f32.gmra.mrb[22].mxu1 %vm328_vm0, %v6142_v2  ;;  %v6372_v2 = vld [vmem:[%s5930_s21 + $0x98] sm:$0xff] }
  0x4e   : > { %5123 = vmatmul.mubr.msk.f32.gmra.mrb[6].mxu0 %vm328_vm0, %v6147_v3  ;;  %4869 = vmatprep.mubr.msk.f32.mxu1 %vm328_vm0, %v6150_v4  ;;  %v6363_v4 = vld [vmem:[%s5930_s21 + $0x16a] sm:$0xff]  ;;  %7152 = vst [vmem:[#allocation31_spill] sm:$0xff] %v6372_v2 }
  0x4f   : > { %5125 = vmatprep.mubr.msk.f32.mxu0 %vm328_vm0, %v6153_v5  ;;  %7151 = vst [vmem:[#allocation30_spill] sm:$0xff] %v6363_v4 }
  0x51   : > { %4870 = vmatmul.mubr.msk.f32.gmra.mrb[24].mxu1 %vm328_vm0, %v6162_v6  ;;  %v6360_v6 = vld [vmem:[%s5930_s21 + $0x90] sm:$0xff] }
  0x52   : > { %5126 = vmatmul.mubr.msk.f32.gmra.mrb[8].mxu0 %vm328_vm0, %v6167_v8  ;;  %4872 = vmatprep.mubr.msk.f32.mxu1 %vm328_vm0, %v6170_v9  ;;  %v6357_v9 = vld [vmem:[%s5930_s21 + $0x15a] sm:$0xff]  ;;  %7150 = vst [vmem:[#allocation29_spill] sm:$0xff] %v6360_v6 }
  0x53   : > { %5128 = vmatprep.mubr.msk.f32.mxu0 %vm328_vm0, %v6173_v10 }
  0x55   : > { %4873 = vmatmul.mubr.msk.f32.gmra.mrb[26].mxu1 %vm328_vm0, %v6182_v11  ;;  %v6352_v11 = vld [vmem:[%s5930_s21 + $0x80] sm:$0xff] }
  0x56   : > { %5129 = vmatmul.mubr.msk.f32.gmra.mrb[10].mxu0 %vm328_vm0, %v6187_v13  ;;  %4875 = vmatprep.mubr.msk.f32.mxu1 %vm328_vm0, %v6190_v14  ;;  %v6343_v14 = vld [vmem:[%s5930_s21 + $0x152] sm:$0xff]  ;;  %7149 = vst [vmem:[#allocation28_spill] sm:$0xff] %v6352_v11 }
  0x57   : > { %5131 = vmatprep.mubr.msk.f32.mxu0 %vm328_vm0, %v6193_v15 }
  0x59   : > { %4876 = vmatmul.mubr.msk.f32.gmra.mrb[28].mxu1 %vm328_vm0, %v6202_v16  ;;  %v6340_v16 = vld [vmem:[%s5930_s21 + $0x78] sm:$0xff] }
  0x5a   : > { %5132 = vmatmul.mubr.msk.f32.gmra.mrb[12].mxu0 %vm328_vm0, %v6207_v17  ;;  %4878 = vmatprep.mubr.msk.f32.mxu1 %vm328_vm0, %v6210_v18  ;;  %v6337_v18 = vld [vmem:[%s5930_s21 + $0x142] sm:$0xff]  ;;  %7148 = vst [vmem:[#allocation27_spill] sm:$0xff] %v6340_v16 }
  0x5b   : > { %5134 = vmatprep.mubr.msk.f32.mxu0 %vm328_vm0, %v6213_v19 }
  0x5d   : > { %4879 = vmatmul.mubr.msk.f32.gmra.mrb[30].mxu1 %vm328_vm0, %v6222_v20  ;;  %v6332_v20 = vld [vmem:[%s5930_s21 + $0x68] sm:$0xff] }
  0x5e   : > { %5135 = vmatmul.mubr.msk.f32.gmra.mrb[14].mxu0 %vm328_vm0, %v6227_v21  ;;  %4889 = vmatprep.mubr.msk.f32.mxu1 %vm328_vm0, %v255_v22  ;;  %v6296_v22 = vld [vmem:[%s5930_s21 + $0x112] sm:$0xff]  ;;  %7147 = vst [vmem:[#allocation26_spill] sm:$0xff] %v6332_v20 }
  0x5f   : > { %5137 = vmatprep.mubr.msk.f32.mxu0 %vm328_vm0, %v6231_v23 }
  0x61   : > { %4890 = vmatmul.mubr.msk.f32.vlgmr.msra.gmra.mrb[0].mxu1 %vm328_vm0, %v256_v26  ;;  %v6312_v26 = vld [vmem:[%s5930_s21 + $0x50] sm:$0xff] }
  0x62   : > { %5138 = vmatmul.mubr.msk.f32.gmra.mrb[16].mxu0 %vm328_vm0, %v6248_v28  ;;  %5348 = vmatpush3.bf16.msra.mxu1 %v5978_v36  ;;  %v6291_v36 = vld [vmem:[%s5930_s21 + $0x38] sm:$0xff] }
  0x63   : > { %4892 = vmatprep.mubr.msk.f32.mxu1 %vm328_vm0, %v6251_v29  ;;  %5140 = vmatprep.mubr.msk.f32.mxu0 %vm328_vm0, %v6254_v30  ;;  %v6400_v29 = vld [vmem:[%s5930_s21 + $0xc0] sm:$0xff] }
  0x64   : > { %5350 = vmatprep.subr.bf16.mxu1 %v5349_v31  ;;  %7158 = vst [vmem:[#allocation37_spill] sm:$0xff] %v6400_v29 }
  0x65   : > { %4893 = vmatmul.mubr.msk.f32.gmra.mrb[2].mxu1 %vm328_vm0, %v6267_v49  ;;  %v6392_v49 = vld [vmem:[%s5930_s21 + $0xb0] sm:$0xff] }
  0x66   : > { %5141 = vmatmul.mubr.msk.f32.gmra.mrb[18].mxu0 %vm328_vm0, %v6274_v50  ;;  %4895 = vmatprep.mubr.msk.f32.mxu1 %vm328_vm0, %v6277_v54  ;;  %7156 = vst [vmem:[#allocation35_spill] sm:$0xff] %v6392_v49 }
  0x67   : > { %5143 = vmatprep.mubr.msk.f32.mxu0 %vm328_vm0, %v6280_v55  ;;  %5352 = vmatpush3.bf16.msra.mxu1 %v5349_v31  ;;  %v6317_v31 = vld [vmem:[%s5930_s21 + $0x12a] sm:$0xff] }
  0x68   : > { %5354 = vmatprep.subr.bf16.mxu1 %v6282_v56 }
  0x69   : > { %4896 = vmatmul.mubr.msk.f32.gmra.mrb[4].mxu1 %vm328_vm0, %v6291_v36 }
  0x6a   : > { %5144 = vmatmul.mubr.msk.f32.gmra.mrb[20].mxu0 %vm328_vm0, %v6296_v22  ;;  %4898 = vmatprep.mubr.msk.f32.mxu1 %vm328_vm0, %v6299_v24 }
  0x6b   : > { %5146 = vmatprep.mubr.msk.f32.mxu0 %vm328_vm0, %v6302_v25 }
  0x6d   : > { %4899 = vmatmul.mubr.msk.f32.gmra.mrb[6].mxu1 %vm328_vm0, %v6312_v26 }
  0x6e   : > { %5147 = vmatmul.mubr.msk.f32.gmra.mrb[22].mxu0 %vm328_vm0, %v6317_v31  ;;  %4901 = vmatprep.mubr.msk.f32.mxu1 %vm328_vm0, %v6320_v32 }
  0x6f   : > { %5149 = vmatprep.mubr.msk.f32.mxu0 %vm328_vm0, %v6323_v35 }
  0x71   : > { %4902 = vmatmul.mubr.msk.f32.gmra.mrb[8].mxu1 %vm328_vm0, %v6332_v20 }
  0x72   : > { %5150 = vmatmul.mubr.msk.f32.gmra.mrb[24].mxu0 %vm328_vm0, %v6337_v18  ;;  %4904 = vmatprep.mubr.msk.f32.mxu1 %vm328_vm0, %v6340_v16 }
  0x73   : > { %5152 = vmatprep.mubr.msk.f32.mxu0 %vm328_vm0, %v6343_v14 }
  0x75   : > { %4905 = vmatmul.mubr.msk.f32.gmra.mrb[10].mxu1 %vm328_vm0, %v6352_v11 }
  0x76   : > { %5153 = vmatmul.mubr.msk.f32.gmra.mrb[26].mxu0 %vm328_vm0, %v6357_v9  ;;  %4907 = vmatprep.mubr.msk.f32.mxu1 %vm328_vm0, %v6360_v6 }
  0x77   : > { %5155 = vmatprep.mubr.msk.f32.mxu0 %vm328_vm0, %v6363_v4 }
  0x79   : > { %4908 = vmatmul.mubr.msk.f32.gmra.mrb[12].mxu1 %vm328_vm0, %v6372_v2 }
  0x7a   : > { %5156 = vmatmul.mubr.msk.f32.gmra.mrb[28].mxu0 %vm328_vm0, %v6377_v12  ;;  %4910 = vmatprep.mubr.msk.f32.mxu1 %vm328_vm0, %v6380_v0  ;;  %v4392_v12 = vld [vmem:[%s7068_s1 + $0xf8] sm:$0xff] }
  0x7b   : > { %5158 = vmatprep.mubr.msk.f32.mxu0 %vm328_vm0, %v6383_v62  ;;  %v6415_v62 = vld [vmem:[%s5930_s21 + $0xc8] sm:$0xff]  ;;  %v5389_v4 = vpack.c.bf16 %v4392_v12, %v4391_v57  ;;  %v6441_v12 = vld [vmem:[%s5930_s21 + $0xf0] sm:$0xff] }
  0x7c   : > { %7159 = vst [vmem:[#allocation38_spill] sm:$0xff] %v6415_v62 }
  0x7d   : > { %4911 = vmatmul.mubr.msk.f32.gmra.mrb[14].mxu1 %vm328_vm0, %v6392_v49 }
  0x7e   : > { %5159 = vmatmul.mubr.msk.f32.gmra.mrb[30].mxu0 %vm328_vm0, %v6397_v59  ;;  %4913 = vmatprep.mubr.msk.f32.mxu1 %vm328_vm0, %v6400_v29  ;;  %v4457_v59 = vld [vmem:[%s7068_s1 + $0x100] sm:$0xff] }
  0x7f   : > { %5169 = vmatprep.mubr.msk.f32.mxu0 %vm328_vm0, %v6277_v54  ;;  %v6435_v54 = vld [vmem:[%s5930_s21 + $0xe0] sm:$0xff]  ;;  %v6443_v57 = vpack.c.bf16 %v4458_v47, %v4457_v59  ;;  %v6467_v47 = vld [vmem:[%s5930_s21 + $0x110] sm:$0xff] }
  0x80   : > { %v6472_v59 = vld [vmem:[%s5930_s21 + $0x120] sm:$0xff] }
  0x81   : > { %4914 = vmatmul.mubr.msk.f32.gmra.mrb[16].mxu1 %vm328_vm0, %v6415_v62 }
  0x82   : > { %5170 = vmatmul.mubr.msk.f32.vlgmr.msra.gmra.mrb[0].mxu0 %vm328_vm0, %v6291_v36  ;;  %4916 = vmatprep.mubr.msk.f32.mxu1 %vm328_vm0, %v6420_v52 }
  0x83   : > { %5388 = vmatpush3.bf16.msra.mxu0 %v6112_v61  ;;  %5172 = vmatprep.mubr.msk.f32.mxu0 %vm328_vm0, %v6299_v24  ;;  %v6452_v61 = vld [vmem:[%s5930_s21 + $0xf8] sm:$0xff]  ;;  %v6457_v24 = vld [vmem:[%s5930_s21 + $0x108] sm:$0xff] }
  0x84   : > { %5390 = vmatprep.subr.bf16.mxu0 %v5389_v4 }
  0x85   : > { %4917 = vmatmul.mubr.msk.f32.gmra.mrb[18].mxu1 %vm328_vm0, %v6435_v54 }
  0x86   : > { %5173 = vmatmul.mubr.msk.f32.gmra.mrb[2].mxu0 %vm328_vm0, %v6312_v26  ;;  %4919 = vmatprep.mubr.msk.f32.mxu1 %vm328_vm0, %v6441_v12 }
  0x87   : > { %5175 = vmatprep.mubr.msk.f32.mxu0 %vm328_vm0, %v6320_v32  ;;  %5392 = vmatpush3.bf16.msra.mxu0 %v5389_v4  ;;  %v6481_v4 = vld [vmem:[%s5930_s21 + $0x128] sm:$0xff] }
  0x88   : > { %5394 = vmatprep.subr.bf16.mxu0 %v6443_v57  ;;  %v972_v32 = vld [vmem:[%s5930_s21 + $0xa] sm:$0xff] }
  0x89   : > { %4920 = vmatmul.mubr.msk.f32.gmra.mrb[20].mxu1 %vm328_vm0, %v6452_v61 }
  0x8a   : > { %5176 = vmatmul.mubr.msk.f32.gmra.mrb[4].mxu0 %vm328_vm0, %v6332_v20  ;;  %4922 = vmatprep.mubr.msk.f32.mxu1 %vm328_vm0, %v6457_v24  ;;  %v6486_v20 = vld [vmem:[%s5930_s21 + $0x138] sm:$0xff] }
  0x8b   : > { %5178 = vmatprep.mubr.msk.f32.mxu0 %vm328_vm0, %v6340_v16  ;;  %v6500_v16 = vld [vmem:[%s5930_s21 + $0x150] sm:$0xff] }
  0x8d   : > { %4923 = vmatmul.mubr.msk.f32.gmra.mrb[22].mxu1 %vm328_vm0, %v6467_v47 }
  0x8e   : > { %5179 = vmatmul.mubr.msk.f32.gmra.mrb[6].mxu0 %vm328_vm0, %v6352_v11  ;;  %4925 = vmatprep.mubr.msk.f32.mxu1 %vm328_vm0, %v6472_v59  ;;  %v6495_v11 = vld [vmem:[%s5930_s21 + $0x140] sm:$0xff] }
  0x8f   : > { %5181 = vmatprep.mubr.msk.f32.mxu0 %vm328_vm0, %v6360_v6  ;;  %v6514_v6 = vld [vmem:[%s5930_s21 + $0x168] sm:$0xff] }
  0x91   : > { %4926 = vmatmul.mubr.msk.f32.gmra.mrb[24].mxu1 %vm328_vm0, %v6481_v4 }
  0x92   : > { %5182 = vmatmul.mubr.msk.f32.gmra.mrb[8].mxu0 %vm328_vm0, %v6372_v2  ;;  %4928 = vmatprep.mubr.msk.f32.mxu1 %vm328_vm0, %v6486_v20  ;;  %v6509_v2 = vld [vmem:[%s5930_s21 + $0x158] sm:$0xff] }
  0x93   : > { %5184 = vmatprep.mubr.msk.f32.mxu0 %vm328_vm0, %v6380_v0  ;;  %v971_v0 = vld [vmem:[%s5930_s21 + $0x2] sm:$0xff] }
  0x95   : > { %4929 = vmatmul.mubr.msk.f32.gmra.mrb[26].mxu1 %vm328_vm0, %v6495_v11 }
  0x96   : > { %5185 = vmatmul.mubr.msk.f32.gmra.mrb[10].mxu0 %vm328_vm0, %v6392_v49  ;;  %4931 = vmatprep.mubr.msk.f32.mxu1 %vm328_vm0, %v6500_v16  ;;  %v6523_v49 = vld [vmem:[%s5930_s21 + $0x170] sm:$0xff] }
  0x97   : > { %5187 = vmatprep.mubr.msk.f32.mxu0 %vm328_vm0, %v6400_v29  ;;  %v4119_v29 = vld [vmem:[%s7068_s1 + $0x70] sm:$0xff] }
  0x99   : > { %4932 = vmatmul.mubr.msk.f32.gmra.mrb[28].mxu1 %vm328_vm0, %v6509_v2 }
  0x9a   : > { %5188 = vmatmul.mubr.msk.f32.gmra.mrb[12].mxu0 %vm328_vm0, %v6415_v62  ;;  %4934 = vmatprep.mubr.msk.f32.mxu1 %vm328_vm0, %v6514_v6  ;;  %v4120_v62 = vld [vmem:[%s7068_s1 + $0x78] sm:$0xff] }
  0x9b   : > { %5190 = vmatprep.mubr.msk.f32.mxu0 %vm328_vm0, %v6420_v52  ;;  %v5357_v52 = vpack.c.bf16 %v4120_v62, %v4119_v29  ;;  %v4320_v62 = vld [vmem:[%s5930_s21 + $0x1a0] sm:$0xff]  ;;  %v4460_v29 = vld [vmem:[%s7068_s1 + $0x118] sm:$0xff] }
  0x9d   : > { %4935 = vmatmul.mubr.msk.f32.gmra.mrb[30].mxu1 %vm328_vm0, %v6523_v49 }
  0x9e   : > { %5191 = vmatmul.mubr.msk.f32.gmra.mrb[14].mxu0 %vm328_vm0, %v6435_v54  ;;  %4945 = vmatprep.mubr.msk.f32.mxu1 %vm328_vm0, %v971_v0  ;;  %v4459_v0 = vld [vmem:[%s7068_s1 + $0x110] sm:$0xff] }
  0x9f   : > { %5193 = vmatprep.mubr.msk.f32.mxu0 %vm328_vm0, %v6441_v12 }
  0xa1   : > { %4946 = vmatmul.mubr.msk.f32.vlgmr.msra.gmra.mrb[0].mxu1 %vm328_vm0, %v972_v32  ;;  %v7174_v32 = vld [vmem:[#allocation24_spill] sm:$0xff] }
  0xa2   : > { %5194 = vmatmul.mubr.msk.f32.gmra.mrb[16].mxu0 %vm328_vm0, %v6452_v61  ;;  %5356 = vmatpush3.bf16.msra.mxu1 %v6282_v56  ;;  %v5397_v56 = vpack.c.bf16 %v4460_v29, %v4459_v0  ;;  %v7180_v0 = vld [vmem:[#allocation16_spill] sm:$0xff]  ;;  %v7181_v29 = vld [vmem:[#allocation27_spill] sm:$0xff] }
  0xa3   : > { %4948 = vmatprep.mubr.msk.f32.mxu1 %vm328_vm0, %v6061_v48  ;;  %5196 = vmatprep.mubr.msk.f32.mxu0 %vm328_vm0, %v6457_v24  ;;  %v6584_v48 = vld [vmem:[%s5930_s21 + $0x180] sm:$0xff] }
  0xa4   : > { %5358 = vmatprep.subr.bf16.mxu1 %v5357_v52 }
  0xa5   : > { %4949 = vmatmul.mubr.msk.f32.gmra.mrb[2].mxu1 %vm328_vm0, %v6078_v51  ;;  %v6595_v51 = vld [vmem:[%s5930_s21 + $0x188] sm:$0xff] }
  0xa6   : > { %5197 = vmatmul.mubr.msk.f32.gmra.mrb[18].mxu0 %vm328_vm0, %v6467_v47  ;;  %4951 = vmatprep.mubr.msk.f32.mxu1 %vm328_vm0, %v6084_v53 }
  0xa7   : > { %5199 = vmatprep.mubr.msk.f32.mxu0 %vm328_vm0, %v6472_v59  ;;  %5360 = vmatpush3.bf16.msra.mxu1 %v5357_v52  ;;  %v4319_v52 = vld [vmem:[%s5930_s21 + $0x198] sm:$0xff] }
  0xa8   : > { %5401 = vmatprep.subr.bf16.mxu1 %v5901_v7 }
  0xa9   : > { %4952 = vmatmul.mubr.msk.f32.gmra.mrb[4].mxu1 %vm328_vm0, %v6104_v58 }
  0xaa   : > { %5200 = vmatmul.mubr.msk.f32.gmra.mrb[20].mxu0 %vm328_vm0, %v6481_v4  ;;  %4954 = vmatprep.mubr.msk.f32.mxu1 %vm328_vm0, %v6110_v60 }
  0xab   : > { %5202 = vmatprep.mubr.msk.f32.mxu0 %vm328_vm0, %v6486_v20 }
  0xad   : > { %4955 = vmatmul.mubr.msk.f32.gmra.mrb[6].mxu1 %vm328_vm0, %v6126_v63 }
  0xae   : > { %5203 = vmatmul.mubr.msk.f32.gmra.mrb[22].mxu0 %vm328_vm0, %v6495_v11  ;;  %4957 = vmatprep.mubr.msk.f32.mxu1 %vm328_vm0, %v6132_v1 }
  0xaf   : > { %5205 = vmatprep.mubr.msk.f32.mxu0 %vm328_vm0, %v6500_v16 }
  0xb1   : > { %4958 = vmatmul.mubr.msk.f32.gmra.mrb[8].mxu1 %vm328_vm0, %v6147_v3 }
  0xb2   : > { %5206 = vmatmul.mubr.msk.f32.gmra.mrb[24].mxu0 %vm328_vm0, %v6509_v2  ;;  %4960 = vmatprep.mubr.msk.f32.mxu1 %vm328_vm0, %v6153_v5 }
  0xb3   : > { %5208 = vmatprep.mubr.msk.f32.mxu0 %vm328_vm0, %v6514_v6 }
  0xb5   : > { %4961 = vmatmul.mubr.msk.f32.gmra.mrb[10].mxu1 %vm328_vm0, %v6167_v8 }
  0xb6   : > { %5209 = vmatmul.mubr.msk.f32.gmra.mrb[26].mxu0 %vm328_vm0, %v6523_v49  ;;  %4963 = vmatprep.mubr.msk.f32.mxu1 %vm328_vm0, %v6173_v10 }
  0xb7   : > { %5211 = vmatprep.mubr.msk.f32.mxu0 %vm328_vm0, %v6584_v48 }
  0xb9   : > { %4964 = vmatmul.mubr.msk.f32.gmra.mrb[12].mxu1 %vm328_vm0, %v6187_v13 }
  0xba   : > { %5212 = vmatmul.mubr.msk.f32.gmra.mrb[28].mxu0 %vm328_vm0, %v6595_v51  ;;  %4966 = vmatprep.mubr.msk.f32.mxu1 %vm328_vm0, %v6193_v15 }
  0xbb   : > { %5214 = vmatprep.mubr.msk.f32.mxu0 %vm328_vm0, %v4319_v52  ;;  %v7177_v52 = vld [vmem:[#allocation25_spill] sm:$0xff] }
  0xbd   : > { %4967 = vmatmul.mubr.msk.f32.gmra.mrb[14].mxu1 %vm328_vm0, %v6207_v17 }
  0xbe   : > { %5215 = vmatmul.mubr.msk.f32.gmra.mrb[30].mxu0 %vm328_vm0, %v4320_v62  ;;  %4969 = vmatprep.mubr.msk.f32.mxu1 %vm328_vm0, %v6213_v19  ;;  %v7179_v62 = vld [vmem:[#allocation26_spill] sm:$0xff] }
  0xbf   : > { %5225 = vmatprep.mubr.msk.f32.mxu0 %vm328_vm0, %v5953_v27  ;;  %v7161_v27 = vld [vmem:[#allocation6_spill] sm:$0xff] }
  0xc1   : > { %4970 = vmatmul.mubr.msk.f32.gmra.mrb[16].mxu1 %vm328_vm0, %v6227_v21 }
  0xc2   : > { %5226 = vmatmul.mubr.msk.f32.vlgmr.msra.gmra.mrb[0].mxu0 %vm328_vm0, %v5970_v33  ;;  %4972 = vmatprep.mubr.msk.f32.mxu1 %vm328_vm0, %v6231_v23  ;;  %v7162_v33 = vld [vmem:[#allocation30_spill] sm:$0xff] }
  0xc3   : > { %5396 = vmatpush3.bf16.msra.mxu0 %v6443_v57  ;;  %5228 = vmatprep.mubr.msk.f32.mxu0 %vm328_vm0, %v5975_v34  ;;  %v7163_v34 = vld [vmem:[#allocation7_spill] sm:$0xff]  ;;  %v7175_v57 = vld [vmem:[#allocation13_spill] sm:$0xff] }
  0xc4   : > { %5398 = vmatprep.subr.bf16.mxu0 %v5397_v56 }
  0xc5   : > { %4973 = vmatmul.mubr.msk.f32.gmra.mrb[18].mxu1 %vm328_vm0, %v6248_v28 }
  0xc6   : > { %5229 = vmatmul.mubr.msk.f32.gmra.mrb[2].mxu0 %vm328_vm0, %v5987_v37  ;;  %4975 = vmatprep.mubr.msk.f32.mxu1 %vm328_vm0, %v6254_v30  ;;  %v7164_v37 = vld [vmem:[#allocation32_spill] sm:$0xff] }
  0xc7   : > { %5231 = vmatprep.mubr.msk.f32.mxu0 %vm328_vm0, %v5990_v38  ;;  %5400 = vmatpush3.bf16.msra.mxu0 %v5397_v56  ;;  %v7165_v38 = vld [vmem:[#allocation8_spill] sm:$0xff] }
  0xc8   : > { %v7183_v56 = vld [vmem:[#allocation28_spill] sm:$0xff] }
  0xc9   : > { %4976 = vmatmul.mubr.msk.f32.gmra.mrb[20].mxu1 %vm328_vm0, %v6274_v50 }
  0xca   : > { %5232 = vmatmul.mubr.msk.f32.gmra.mrb[4].mxu0 %vm328_vm0, %v6002_v39  ;;  %4978 = vmatprep.mubr.msk.f32.mxu1 %vm328_vm0, %v6280_v55  ;;  %v7166_v39 = vld [vmem:[#allocation21_spill] sm:$0xff] }
  0xcb   : > { %5234 = vmatprep.mubr.msk.f32.mxu0 %vm328_vm0, %v6005_v40  ;;  %v7167_v40 = vld [vmem:[#allocation9_spill] sm:$0xff] }
  0xcd   : > { %4979 = vmatmul.mubr.msk.f32.gmra.mrb[22].mxu1 %vm328_vm0, %v6296_v22 }
  0xce   : > { %5235 = vmatmul.mubr.msk.f32.gmra.mrb[6].mxu0 %vm328_vm0, %v6016_v41  ;;  %4981 = vmatprep.mubr.msk.f32.mxu1 %vm328_vm0, %v6302_v25  ;;  %v7168_v41 = vld [vmem:[#allocation22_spill] sm:$0xff] }
  0xcf   : > { %5237 = vmatprep.mubr.msk.f32.mxu0 %vm328_vm0, %v6019_v42  ;;  %v7169_v42 = vld [vmem:[#allocation10_spill] sm:$0xff] }
  0xd1   : > { %4982 = vmatmul.mubr.msk.f32.gmra.mrb[24].mxu1 %vm328_vm0, %v6317_v31 }
  0xd2   : > { %5238 = vmatmul.mubr.msk.f32.gmra.mrb[8].mxu0 %vm328_vm0, %v6030_v43  ;;  %4984 = vmatprep.mubr.msk.f32.mxu1 %vm328_vm0, %v6323_v35  ;;  %v7170_v43 = vld [vmem:[#allocation23_spill] sm:$0xff] }
  0xd3   : > { %5240 = vmatprep.mubr.msk.f32.mxu0 %vm328_vm0, %v6033_v44  ;;  %v7171_v44 = vld [vmem:[#allocation11_spill] sm:$0xff] }
  0xd5   : > { %4985 = vmatmul.mubr.msk.f32.gmra.mrb[26].mxu1 %vm328_vm0, %v6337_v18 }
  0xd6   : > { %5241 = vmatmul.mubr.msk.f32.gmra.mrb[10].mxu0 %vm328_vm0, %v6044_v45  ;;  %4987 = vmatprep.mubr.msk.f32.mxu1 %vm328_vm0, %v6343_v14  ;;  %v7172_v45 = vld [vmem:[#allocation5_spill] sm:$0xff] }
  0xd7   : > { %5243 = vmatprep.mubr.msk.f32.mxu0 %vm328_vm0, %v6047_v46  ;;  %v7173_v46 = vld [vmem:[#allocation12_spill] sm:$0xff] }
  0xd9   : > { %4988 = vmatmul.mubr.msk.f32.gmra.mrb[28].mxu1 %vm328_vm0, %v6357_v9 }
  0xda   : > { %5244 = vmatmul.mubr.msk.f32.gmra.mrb[12].mxu0 %vm328_vm0, %v7161_v27  ;;  %4990 = vmatprep.mubr.msk.f32.mxu1 %vm328_vm0, %v7162_v33  ;;  %v7184_v27 = vld [vmem:[#allocation18_spill] sm:$0xff] }
  0xdb   : > { %5246 = vmatprep.mubr.msk.f32.mxu0 %vm328_vm0, %v7163_v34 }
  0xdd   : > { %4991 = vmatmul.mubr.msk.f32.gmra.mrb[30].mxu1 %vm328_vm0, %v7164_v37 }
  0xde   : > { %5247 = vmatmul.mubr.msk.f32.gmra.mrb[14].mxu0 %vm328_vm0, %v7165_v38  ;;  %5001 = vmatprep.mubr.msk.f32.mxu1 %vm328_vm0, %v7166_v39  ;;  %v7185_v39 = vld [vmem:[#allocation29_spill] sm:$0xff] }
  0xdf   : > { %5249 = vmatprep.mubr.msk.f32.mxu0 %vm328_vm0, %v7167_v40 }
  0xe1   : > { %5002 = vmatmul.mubr.msk.f32.vlgmr.msra.gmra.mrb[0].mxu1 %vm328_vm0, %v7168_v41  ;;  %v7186_v41 = vld [vmem:[#allocation19_spill] sm:$0xff] }
  0xe2   : > { %5250 = vmatmul.mubr.msk.f32.gmra.mrb[16].mxu0 %vm328_vm0, %v7169_v42  ;;  %5403 = vmatpush3.bf16.msra.mxu1 %v5901_v7  ;;  %v7176_v7 = vld [vmem:[#allocation14_spill] sm:$0xff] }
  0xe3   : > { %5004 = vmatprep.mubr.msk.f32.mxu1 %vm328_vm0, %v7170_v43  ;;  %5252 = vmatprep.mubr.msk.f32.mxu0 %vm328_vm0, %v7171_v44  ;;  %v6728_v43 = vld [vmem:[%s5930_s21 + $0x181] sm:$0xff] }
  0xe4   : > { %5402 = vmatprep.subr.bf16.mxu1 %v7172_v45 }
  0xe5   : > { %5005 = vmatmul.mubr.msk.f32.gmra.mrb[2].mxu1 %vm328_vm0, %v6291_v36  ;;  %v7178_v36 = vld [vmem:[#allocation15_spill] sm:$0xff] }
  0xe6   : > { %5253 = vmatmul.mubr.msk.f32.gmra.mrb[18].mxu0 %vm328_vm0, %v7173_v46  ;;  %5007 = vmatprep.mubr.msk.f32.mxu1 %vm328_vm0, %v7174_v32  ;;  %v7188_v32 = vld [vmem:[#allocation20_spill] sm:$0xff] }
  0xe7   : > { %5255 = vmatprep.mubr.msk.f32.mxu0 %vm328_vm0, %v7175_v57  ;;  %5404 = vmatpush3.bf16.msra.mxu1 %v7172_v45  ;;  %v7187_v45 = vld [vmem:[#allocation31_spill] sm:$0xff] }
  0xe9   : > { %5008 = vmatmul.mubr.msk.f32.gmra.mrb[4].mxu1 %vm328_vm0, %v6312_v26  ;;  %v7182_v26 = vld [vmem:[#allocation17_spill] sm:$0xff] }
  0xea   : > { %5256 = vmatmul.mubr.msk.f32.gmra.mrb[20].mxu0 %vm328_vm0, %v7176_v7  ;;  %5010 = vmatprep.mubr.msk.f32.mxu1 %vm328_vm0, %v7177_v52  ;;  %v7189_v52 = vld [vmem:[#allocation33_spill] sm:$0xff] }
  0xeb   : > { %5258 = vmatprep.mubr.msk.f32.mxu0 %vm328_vm0, %v7178_v36 }
  0xed   : > { %5011 = vmatmul.mubr.msk.f32.gmra.mrb[6].mxu1 %vm328_vm0, %v7179_v62  ;;  %v6739_v62 = vld [vmem:[%s5930_s21 + $0x189] sm:$0xff] }
  0xee   : > { %5259 = vmatmul.mubr.msk.f32.gmra.mrb[22].mxu0 %vm328_vm0, %v7180_v0  ;;  %5013 = vmatprep.mubr.msk.f32.mxu1 %vm328_vm0, %v7181_v29  ;;  %v4387_v29 = vld [vmem:[%s5930_s21 + $0x199] sm:$0xff] }
  0xef   : > { %5261 = vmatprep.mubr.msk.f32.mxu0 %vm328_vm0, %v7182_v26 }
  0xf1   : > { %5014 = vmatmul.mubr.msk.f32.gmra.mrb[8].mxu1 %vm328_vm0, %v7183_v56  ;;  %v7190_v56 = vld [vmem:[#allocation35_spill] sm:$0xff] }
  0xf2   : > { %5262 = vmatmul.mubr.msk.f32.gmra.mrb[24].mxu0 %vm328_vm0, %v7184_v27  ;;  %5016 = vmatprep.mubr.msk.f32.mxu1 %vm328_vm0, %v7185_v39  ;;  %v7191_v39 = vld [vmem:[#allocation37_spill] sm:$0xff] }
  0xf3   : > { %5264 = vmatprep.mubr.msk.f32.mxu0 %vm328_vm0, %v7186_v41 }
  0xf5   : > { %5017 = vmatmul.mubr.msk.f32.gmra.mrb[10].mxu1 %vm328_vm0, %v7187_v45  ;;  %v4388_v45 = vld [vmem:[%s5930_s21 + $0x1a1] sm:$0xff] }
  0xf6   : > { %5265 = vmatmul.mubr.msk.f32.gmra.mrb[26].mxu0 %vm328_vm0, %v7188_v32  ;;  %5019 = vmatprep.mubr.msk.f32.mxu1 %vm328_vm0, %v7189_v52  ;;  %v7192_v32 = vld [vmem:[#allocation38_spill] sm:$0xff]  ;;  %v7193_v52 = vld [vmem:[#allocation39_spill] sm:$0xff] }
  0xf7   : > { %5267 = vmatprep.mubr.msk.f32.mxu0 %vm328_vm0, %v6728_v43 }
  0xf9   : > { %5020 = vmatmul.mubr.msk.f32.gmra.mrb[12].mxu1 %vm328_vm0, %v7190_v56 }
  0xfa   : > { %5268 = vmatmul.mubr.msk.f32.gmra.mrb[28].mxu0 %vm328_vm0, %v6739_v62  ;;  %5022 = vmatprep.mubr.msk.f32.mxu1 %vm328_vm0, %v7191_v39 }
  0xfb   : > { %5270 = vmatprep.mubr.msk.f32.mxu0 %vm328_vm0, %v4387_v29 }
  0xfd   : > { %5023 = vmatmul.mubr.msk.f32.gmra.mrb[14].mxu1 %vm328_vm0, %v7192_v32 }
  0xfe   : > { %5271 = vmatmul.mubr.msk.f32.gmra.mrb[30].mxu0 %vm328_vm0, %v4388_v45  ;;  %5025 = vmatprep.mubr.msk.f32.mxu1 %vm328_vm0, %v7193_v52 }
  0xff   : > { %5281 = vmatprep.mubr.msk.f32.mxu0 %vm328_vm0, %v6084_v53  ;;  %v7194_v53 = vld [vmem:[#allocation34_spill] sm:$0xff] }
 0x101   : > { %5026 = vmatmul.mubr.msk.f32.gmra.mrb[16].mxu1 %vm328_vm0, %v6435_v54 }
 0x102   : > { %5282 = vmatmul.mubr.msk.f32.vlgmr.msra.gmra.mrb[0].mxu0 %vm328_vm0, %v6104_v58  ;;  %5028 = vmatprep.mubr.msk.f32.mxu1 %vm328_vm0, %v6441_v12  ;;  %v4455_v58 = vld [vmem:[%s5930_s21 + $0x19a] sm:$0xff] }
 0x103   : > { %5284 = vmatprep.mubr.msk.f32.mxu0 %vm328_vm0, %v6110_v60  ;;  %v7195_v60 = vld [vmem:[#allocation20_spill] sm:$0xff] }
 0x105   : > { %5029 = vmatmul.mubr.msk.f32.gmra.mrb[18].mxu1 %vm328_vm0, %v6452_v61 }
 0x106   : > { %5285 = vmatmul.mubr.msk.f32.gmra.mrb[2].mxu0 %vm328_vm0, %v6126_v63  ;;  %5031 = vmatprep.mubr.msk.f32.mxu1 %vm328_vm0, %v6457_v24  ;;  %v7196_v63 = vld [vmem:[#allocation36_spill] sm:$0xff] }
 0x107   : > { %5287 = vmatprep.mubr.msk.f32.mxu0 %vm328_vm0, %v6132_v1  ;;  %v4456_v1 = vld [vmem:[%s5930_s21 + $0x1a2] sm:$0xff]  ;;  %s237_s21 = sand.u32 1, %s5781_s16  }
 0x108   : > { %s3979_s7 = sshll.u32 %s237_s21, 8  ;;  %s7021_s18 = scalar_lea.sflag [#allocation3], %s237_s21 }
 0x109   : > { %5032 = vmatmul.mubr.msk.f32.gmra.mrb[20].mxu1 %vm328_vm0, %v6467_v47  ;;  %s6912_s8 = scalar_lea.vmem [#allocation2], %s3979_s7 }
 0x10a   : > { %5288 = vmatmul.mubr.msk.f32.gmra.mrb[4].mxu0 %vm328_vm0, %v6147_v3  ;;  %5034 = vmatprep.mubr.msk.f32.mxu1 %vm328_vm0, %v6472_v59  ;;  %s3860_s10 = sshll.u32 %s6912_s8, 4  ;;  %s7015_s10 = int_to_ptr.vmem [resolvable:$true] %s3860_s10 }
 0x10b   : > { %5290 = vmatprep.mubr.msk.f32.mxu0 %vm328_vm0, %v6153_v5  ;;  %s5719_s14 = scalar_lea.vmem %s7015_s10, 4096  ;;  %p5726_p1 = scmp.lt.s32.totalorder %s7015_s10, %s5724_s24 }
 0x10c   : > { %p5720_p12 = scmp.ne.s32.totalorder %s7015_s10, %s5719_s14  ;;  %p5727_p2 = scmp.lt.s32.totalorder %s5725_s26, %s5719_s14 }
 0x10d   : > { %5035 = vmatmul.mubr.msk.f32.gmra.mrb[22].mxu1 %vm328_vm0, %v6481_v4 }
 0x10e   : > { %5291 = vmatmul.mubr.msk.f32.gmra.mrb[6].mxu0 %vm328_vm0, %v6167_v8  ;;  %5037 = vmatprep.mubr.msk.f32.mxu1 %vm328_vm0, %v6486_v20  ;;  %p5721_p13 = pnand %p5720_p12, %p5867_p4  ;;  %p5728_p3 = por %p5727_p2, %p5726_p1 }
 0x10f   : > { %5293 = vmatprep.mubr.msk.f32.mxu0 %vm328_vm0, %v6173_v10 }
 0x110   : > { %p5722_p0 = pneg %p5721_p13 }
 0x111   : > { %5038 = vmatmul.mubr.msk.f32.gmra.mrb[24].mxu1 %vm328_vm0, %v6495_v11 }
 0x112   : > { %5294 = vmatmul.mubr.msk.f32.gmra.mrb[8].mxu0 %vm328_vm0, %v6187_v13  ;;  %5040 = vmatprep.mubr.msk.f32.mxu1 %vm328_vm0, %v6500_v16  ;;  %p5729_p5 = pnand %p5728_p3, %p5722_p0 }
 0x113   : > { %5296 = vmatprep.mubr.msk.f32.mxu0 %vm328_vm0, %v6193_v15 }
 0x115   : > { %5041 = vmatmul.mubr.msk.f32.gmra.mrb[26].mxu1 %vm328_vm0, %v6509_v2 }
 0x116   : > { %5297 = vmatmul.mubr.msk.f32.gmra.mrb[10].mxu0 %vm328_vm0, %v6207_v17  ;;  %5043 = vmatprep.mubr.msk.f32.mxu1 %vm328_vm0, %v6514_v6 }
 0x117   : > { %5299 = vmatprep.mubr.msk.f32.mxu0 %vm328_vm0, %v6213_v19 }
 0x119   : > { %5044 = vmatmul.mubr.msk.f32.gmra.mrb[28].mxu1 %vm328_vm0, %v6523_v49  ;;  %v6902_v49 = vld [vmem:[%s7070_s3] ss:$0 sm:$0xff] }
 0x11a   : > { %5300 = vmatmul.mubr.msk.f32.gmra.mrb[12].mxu0 %vm328_vm0, %v6227_v21  ;;  %5046 = vmatprep.mubr.msk.f32.mxu1 %vm328_vm0, %v6584_v48 }
 0x11b   : > { %5302 = vmatprep.mubr.msk.f32.mxu0 %vm328_vm0, %v6231_v23  ;;  %v6897_v23 = vld [vmem:[%s7069_s2] ss:$0 sm:$0xff] }
 0x11d   : > { %5047 = vmatmul.mubr.msk.f32.gmra.mrb[30].mxu1 %vm328_vm0, %v6595_v51 }
 0x11e   : > { %5303 = vmatmul.mubr.msk.f32.gmra.mrb[14].mxu0 %vm328_vm0, %v6248_v28  ;;  %5081 = vmatprep.mubr.msk.f32.mxu1 %vm328_vm0, %v7163_v34 }
 0x11f   : > { %5305 = vmatprep.mubr.msk.f32.mxu0 %vm328_vm0, %v6254_v30 }
 0x121   : > { %5082 = vmatmul.mubr.msk.f32.vlgmr.msra.gmra.mrb[16].mxu1 %vm328_vm0, %v7165_v38 }
 0x122   : > { %5306 = vmatmul.mubr.msk.f32.gmra.mrb[16].mxu0 %vm328_vm0, %v6274_v50  ;;  %5084 = vmatprep.mubr.msk.f32.mxu1 %vm328_vm0, %v7167_v40 }
 0x123   : > { %5308 = vmatprep.mubr.msk.f32.mxu0 %vm328_vm0, %v6280_v55 }
 0x125   : > { %5085 = vmatmul.mubr.msk.f32.gmra.mrb[18].mxu1 %vm328_vm0, %v7169_v42 }
 0x126   : > { %5309 = vmatmul.mubr.msk.f32.gmra.mrb[18].mxu0 %vm328_vm0, %v6296_v22  ;;  %5087 = vmatprep.mubr.msk.f32.mxu1 %vm328_vm0, %v7171_v44 }
 0x127   : > { %5311 = vmatprep.mubr.msk.f32.mxu0 %vm328_vm0, %v6302_v25 }
 0x129   : > { %5088 = vmatmul.mubr.msk.f32.gmra.mrb[20].mxu1 %vm328_vm0, %v7173_v46 }
 0x12a   : > { %5312 = vmatmul.mubr.msk.f32.gmra.mrb[20].mxu0 %vm328_vm0, %v6317_v31  ;;  %5090 = vmatprep.mubr.msk.f32.mxu1 %vm328_vm0, %v7175_v57 }
 0x12b   : > { %5314 = vmatprep.mubr.msk.f32.mxu0 %vm328_vm0, %v6323_v35 }
 0x12d   : > { %5091 = vmatmul.mubr.msk.f32.gmra.mrb[22].mxu1 %vm328_vm0, %v7176_v7 }
 0x12e   : > { %5315 = vmatmul.mubr.msk.f32.gmra.mrb[22].mxu0 %vm328_vm0, %v6337_v18  ;;  %5093 = vmatprep.mubr.msk.f32.mxu1 %vm328_vm0, %v7178_v36 }
 0x12f   : > { %5317 = vmatprep.mubr.msk.f32.mxu0 %vm328_vm0, %v6343_v14 }
 0x131   : > { %5094 = vmatmul.mubr.msk.f32.gmra.mrb[24].mxu1 %vm328_vm0, %v7180_v0 }
 0x132   : > { %5318 = vmatmul.mubr.msk.f32.gmra.mrb[24].mxu0 %vm328_vm0, %v6357_v9  ;;  %5096 = vmatprep.mubr.msk.f32.mxu1 %vm328_vm0, %v7182_v26 }
 0x133   : > { %5320 = vmatprep.mubr.msk.f32.mxu0 %vm328_vm0, %v7162_v33 }
 0x135   : > { %5097 = vmatmul.mubr.msk.f32.gmra.mrb[26].mxu1 %vm328_vm0, %v7184_v27 }
 0x136   : > { %5321 = vmatmul.mubr.msk.f32.gmra.mrb[26].mxu0 %vm328_vm0, %v7164_v37  ;;  %5099 = vmatprep.mubr.msk.f32.mxu1 %vm328_vm0, %v7186_v41 }
 0x137   : > { %5323 = vmatprep.mubr.msk.f32.mxu0 %vm328_vm0, %v7194_v53 }
 0x139   : > { %5100 = vmatmul.mubr.msk.f32.gmra.mrb[28].mxu1 %vm328_vm0, %v7195_v60 }
 0x13a   : > { %5324 = vmatmul.mubr.msk.f32.gmra.mrb[28].mxu0 %vm328_vm0, %v7196_v63  ;;  %5102 = vmatprep.mubr.msk.f32.mxu1 %vm328_vm0, %v6728_v43 }
 0x13b   : > { %5326 = vmatprep.mubr.msk.f32.mxu0 %vm328_vm0, %v4455_v58 }
 0x13d   : > { %5103 = vmatmul.mubr.msk.f32.gmra.mrb[30].mxu1 %vm328_vm0, %v6739_v62 }
 0x13e   : > { %5327 = vmatmul.mubr.msk.f32.gmra.mrb[30].mxu0 %vm328_vm0, %v4456_v1 }
 0x1b4   : > { %v5003_v2 = vpop.f32.mrb[0].mxu1 }
 0x1b5   : > { %v1561_v3 = vpop.f32.mrb[1].mxu1 }
 0x1b8   : > { %v5006_v5 = vpop.f32.mrb[2].mxu1 }
 0x1b9   : > { %v1571_v6 = vpop.f32.mrb[3].mxu1 }
 0x1bc   : > { %v5009_v8 = vpop.f32.mrb[4].mxu1 }
 0x1bd   : > { %v1581_v9 = vpop.f32.mrb[5].mxu1 }
 0x1c0   : > { %v5012_v10 = vpop.f32.mrb[6].mxu1 }
 0x1c1   : > { %v1591_v11 = vpop.f32.mrb[7].mxu1 }
 0x1c4   : > { %v5015_v13 = vpop.f32.mrb[8].mxu1 }
 0x1c5   : > { %v1601_v14 = vpop.f32.mrb[9].mxu1 }
 0x1c8   : > { %v6881_v15 = vpop.f32.mrb[10].mxu1 }
 0x1c9   : > { %v6883_v16 = vpop.f32.mrb[11].mxu1 }
 0x1cc   : > { %v6885_v17 = vpop.f32.mrb[12].mxu1 }
 0x1cd   : > { %v6887_v18 = vpop.f32.mrb[13].mxu1 }
 0x1d0   : > { %v6889_v19 = vpop.f32.mrb[14].mxu1 }
 0x1d1   : > { %v6891_v20 = vpop.f32.mrb[15].mxu1 }
 0x1d5   : > { %v5283_v21 = vpop.f32.mrb[0].mxu0 }
 0x1d6   : > { %v5405_v28 = vadd.f32 %v5283_v21, %v5003_v2  ;;  %v3512_v30 = vpop.f32.mrb[1].mxu0 }
 0x1d7   : > { %v5406_v50 = vadd.f32 %v3512_v30, %v1561_v3 }
 0x1d8   : > { %v3711_v54 = vmul.f32 %v5405_v28, %v6897_v23 }
 0x1d9   : > { %v3710_v55 = vmul.f32 %v5406_v50, %v6897_v23  ;;  %v5286_v22 = vpop.f32.mrb[2].mxu0 }
 0x1da   : > { %v3750_v24 = vadd.f32 %v6902_v49, %v3711_v54  ;;  %v5407_v25 = vadd.f32 %v5286_v22, %v5006_v5  ;;  %v3522_v31 = vpop.f32.mrb[3].mxu0 }
 0x1db   : > { %v3749_v35 = vadd.f32 %v6902_v49, %v3710_v55  ;;  %v5408_v12 = vadd.f32 %v3522_v31, %v1571_v6 }
 0x1dc   : > { %v3782_v61 = vmax.f32 %v3750_v24, 0.0  ;;  %v3713_v47 = vmul.f32 %v5407_v25, %v6897_v23 }
 0x1dd   : > { %v3781_v59 = vmax.f32 %v3749_v35, 0.0  ;;  %v3712_v4 = vmul.f32 %v5408_v12, %v6897_v23  ;;  %v5289_v48 = vpop.f32.mrb[4].mxu0 }
 0x1de   : > { %3814 = vst [vmem:[%s6912_s8 + $0x8] sm:$0xff] %v3782_v61  ;;  %v3752_v51 = vadd.f32 %v6902_v49, %v3713_v47  ;;  %v5409_v33 = vadd.f32 %v5289_v48, %v5009_v8  ;;  %v3532_v34 = vpop.f32.mrb[5].mxu0 }
 0x1df   : > { %3813 = vst [vmem:[%s6912_s8] sm:$0xff] %v3781_v59  ;;  %v3751_v37 = vadd.f32 %v6902_v49, %v3712_v4  ;;  %v5410_v38 = vadd.f32 %v3532_v34, %v1581_v9 }
 0x1e0   : > { %v3784_v40 = vmax.f32 %v3752_v51, 0.0  ;;  %v3715_v42 = vmul.f32 %v5409_v33, %v6897_v23 }
 0x1e1   : > { %v3783_v44 = vmax.f32 %v3751_v37, 0.0  ;;  %v3714_v46 = vmul.f32 %v5410_v38, %v6897_v23  ;;  %v5292_v57 = vpop.f32.mrb[6].mxu0 }
 0x1e2   : > { %3816 = vst [vmem:[%s6912_s8 + $0x18] sm:$0xff] %v3784_v40  ;;  %v3754_v7 = vadd.f32 %v6902_v49, %v3715_v42  ;;  %v5411_v36 = vadd.f32 %v5292_v57, %v5012_v10  ;;  %v3542_v0 = vpop.f32.mrb[7].mxu0 }
 0x1e3   : > { %3815 = vst [vmem:[%s6912_s8 + $0x10] sm:$0xff] %v3783_v44  ;;  %v3753_v26 = vadd.f32 %v6902_v49, %v3714_v46  ;;  %v5412_v27 = vadd.f32 %v3542_v0, %v1591_v11 }
 0x1e4   : > { %v3786_v41 = vmax.f32 %v3754_v7, 0.0  ;;  %v3717_v43 = vmul.f32 %v5411_v36, %v6897_v23 }
 0x1e5   : > { %v3785_v32 = vmax.f32 %v3753_v26, 0.0  ;;  %v3716_v62 = vmul.f32 %v5412_v27, %v6897_v23  ;;  %v5295_v29 = vpop.f32.mrb[8].mxu0 }
 0x1e6   : > { %3818 = vst [vmem:[%s6912_s8 + $0x28] sm:$0xff] %v3786_v41  ;;  %v3756_v56 = vadd.f32 %v6902_v49, %v3717_v43  ;;  %v5413_v39 = vadd.f32 %v5295_v29, %v5015_v13  ;;  %v3552_v45 = vpop.f32.mrb[9].mxu0 }
 0x1e7   : > { %3817 = vst [vmem:[%s6912_s8 + $0x20] sm:$0xff] %v3785_v32  ;;  %v3755_v52 = vadd.f32 %v6902_v49, %v3716_v62  ;;  %v5414_v53 = vadd.f32 %v3552_v45, %v1601_v14 }
 0x1e8   : > { %v3788_v58 = vmax.f32 %v3756_v56, 0.0  ;;  %v3719_v60 = vmul.f32 %v5413_v39, %v6897_v23 }
 0x1e9   : > { %v3787_v63 = vmax.f32 %v3755_v52, 0.0  ;;  %v3718_v1 = vmul.f32 %v5414_v53, %v6897_v23  ;;  %v5298_v2 = vpop.f32.mrb[10].mxu0 }
 0x1ea   : > { %3820 = vst [vmem:[%s6912_s8 + $0x38] sm:$0xff] %v3788_v58  ;;  %v3758_v3 = vadd.f32 %v6902_v49, %v3719_v60  ;;  %v5415_v5 = vadd.f32 %v5298_v2, %v6881_v15  ;;  %v3562_v6 = vpop.f32.mrb[11].mxu0 }
 0x1eb   : > { %3819 = vst [vmem:[%s6912_s8 + $0x30] sm:$0xff] %v3787_v63  ;;  %v3757_v8 = vadd.f32 %v6902_v49, %v3718_v1  ;;  %v5416_v9 = vadd.f32 %v3562_v6, %v6883_v16 }
 0x1ec   : > { %v3790_v10 = vmax.f32 %v3758_v3, 0.0  ;;  %v3721_v11 = vmul.f32 %v5415_v5, %v6897_v23 }
 0x1ed   : > { %v3789_v13 = vmax.f32 %v3757_v8, 0.0  ;;  %v3720_v14 = vmul.f32 %v5416_v9, %v6897_v23  ;;  %v5301_v21 = vpop.f32.mrb[12].mxu0 }
 0x1ee   : > { %3822 = vst [vmem:[%s6912_s8 + $0x48] sm:$0xff] %v3790_v10  ;;  %v3760_v28 = vadd.f32 %v6902_v49, %v3721_v11  ;;  %v5417_v15 = vadd.f32 %v5301_v21, %v6885_v17  ;;  %v3572_v30 = vpop.f32.mrb[13].mxu0 }
 0x1ef   : > { %3821 = vst [vmem:[%s6912_s8 + $0x40] sm:$0xff] %v3789_v13  ;;  %v3759_v50 = vadd.f32 %v6902_v49, %v3720_v14  ;;  %v5418_v16 = vadd.f32 %v3572_v30, %v6887_v18 }
 0x1f0   : > { %v3792_v54 = vmax.f32 %v3760_v28, 0.0  ;;  %v3723_v55 = vmul.f32 %v5417_v15, %v6897_v23 }
 0x1f1   : > { %v3791_v22 = vmax.f32 %v3759_v50, 0.0  ;;  %v3722_v24 = vmul.f32 %v5418_v16, %v6897_v23  ;;  %v5304_v25 = vpop.f32.mrb[14].mxu0 }
 0x1f2   : > { %3824 = vst [vmem:[%s6912_s8 + $0x58] sm:$0xff] %v3792_v54  ;;  %v3762_v31 = vadd.f32 %v6902_v49, %v3723_v55  ;;  %v5419_v35 = vadd.f32 %v5304_v25, %v6889_v19  ;;  %v3582_v17 = vpop.f32.mrb[15].mxu0 }
 0x1f3   : > { %3823 = vst [vmem:[%s6912_s8 + $0x50] sm:$0xff] %v3791_v22  ;;  %v3761_v12 = vadd.f32 %v6902_v49, %v3722_v24  ;;  %v5420_v18 = vadd.f32 %v3582_v17, %v6891_v20 }
 0x1f4   : > { %v3794_v61 = vmax.f32 %v3762_v31, 0.0  ;;  %v3725_v47 = vmul.f32 %v5419_v35, %v6897_v23  ;;  %v5083_v59 = vpop.f32.mrb[16].mxu1 }
 0x1f5   : > { %v3793_v4 = vmax.f32 %v3761_v12, 0.0  ;;  %v3724_v48 = vmul.f32 %v5420_v18, %v6897_v23  ;;  %v5307_v51 = vpop.f32.mrb[16].mxu0  ;;  %v2031_v33 = vpop.f32.mrb[17].mxu1 }
 0x1f6   : > { %3826 = vst [vmem:[%s6912_s8 + $0x68] sm:$0xff] %v3794_v61  ;;  %v3764_v19 = vadd.f32 %v6902_v49, %v3725_v47  ;;  %v5421_v34 = vadd.f32 %v5307_v51, %v5083_v59  ;;  %v3592_v37 = vpop.f32.mrb[17].mxu0 }
 0x1f7   : > { %3825 = vst [vmem:[%s6912_s8 + $0x60] sm:$0xff] %v3793_v4  ;;  %v3763_v38 = vadd.f32 %v6902_v49, %v3724_v48  ;;  %v5422_v20 = vadd.f32 %v3592_v37, %v2031_v33 }
 0x1f8   : > { %v3796_v40 = vmax.f32 %v3764_v19, 0.0  ;;  %v3727_v42 = vmul.f32 %v5421_v34, %v6897_v23  ;;  %v5086_v44 = vpop.f32.mrb[18].mxu1 }
 0x1f9   : > { %v3795_v46 = vmax.f32 %v3763_v38, 0.0  ;;  %v3726_v57 = vmul.f32 %v5422_v20, %v6897_v23  ;;  %v5310_v7 = vpop.f32.mrb[18].mxu0  ;;  %v2041_v36 = vpop.f32.mrb[19].mxu1 }
 0x1fa   : > { %3828 = vst [vmem:[%s6912_s8 + $0x78] sm:$0xff] %v3796_v40  ;;  %v3766_v0 = vadd.f32 %v6902_v49, %v3727_v42  ;;  %v5423_v26 = vadd.f32 %v5310_v7, %v5086_v44  ;;  %v3602_v27 = vpop.f32.mrb[19].mxu0 }
 0x1fb   : > { %3827 = vst [vmem:[%s6912_s8 + $0x70] sm:$0xff] %v3795_v46  ;;  %v3765_v41 = vadd.f32 %v6902_v49, %v3726_v57  ;;  %v5424_v43 = vadd.f32 %v3602_v27, %v2041_v36 }
 0x1fc   : > { %v3798_v32 = vmax.f32 %v3766_v0, 0.0  ;;  %v3729_v62 = vmul.f32 %v5423_v26, %v6897_v23  ;;  %v5089_v29 = vpop.f32.mrb[20].mxu1 }
 0x1fd   : > { %v3797_v56 = vmax.f32 %v3765_v41, 0.0  ;;  %v3728_v39 = vmul.f32 %v5424_v43, %v6897_v23  ;;  %v5313_v45 = vpop.f32.mrb[20].mxu0  ;;  %v2051_v52 = vpop.f32.mrb[21].mxu1 }
 0x1fe   : > { %3830 = vst [vmem:[%s6912_s8 + $0x88] sm:$0xff] %v3798_v32  ;;  %v3768_v53 = vadd.f32 %v6902_v49, %v3729_v62  ;;  %v5425_v58 = vadd.f32 %v5313_v45, %v5089_v29  ;;  %v3612_v60 = vpop.f32.mrb[21].mxu0 }
 0x1ff   : > { %3829 = vst [vmem:[%s6912_s8 + $0x80] sm:$0xff] %v3797_v56  ;;  %v3767_v63 = vadd.f32 %v6902_v49, %v3728_v39  ;;  %v5426_v1 = vadd.f32 %v3612_v60, %v2051_v52 }
 0x200   : > { %v3800_v2 = vmax.f32 %v3768_v53, 0.0  ;;  %v3731_v3 = vmul.f32 %v5425_v58, %v6897_v23  ;;  %v5092_v5 = vpop.f32.mrb[22].mxu1 }
 0x201   : > { %v3799_v6 = vmax.f32 %v3767_v63, 0.0  ;;  %v3730_v8 = vmul.f32 %v5426_v1, %v6897_v23  ;;  %v5316_v9 = vpop.f32.mrb[22].mxu0  ;;  %v2061_v10 = vpop.f32.mrb[23].mxu1 }
 0x202   : > { %3832 = vst [vmem:[%s6912_s8 + $0x98] sm:$0xff] %v3800_v2  ;;  %v3770_v11 = vadd.f32 %v6902_v49, %v3731_v3  ;;  %v5427_v13 = vadd.f32 %v5316_v9, %v5092_v5  ;;  %v3622_v14 = vpop.f32.mrb[23].mxu0 }
 0x203   : > { %3831 = vst [vmem:[%s6912_s8 + $0x90] sm:$0xff] %v3799_v6  ;;  %v3769_v21 = vadd.f32 %v6902_v49, %v3730_v8  ;;  %v5428_v28 = vadd.f32 %v3622_v14, %v2061_v10 }
 0x204   : > { %v3802_v15 = vmax.f32 %v3770_v11, 0.0  ;;  %v3733_v30 = vmul.f32 %v5427_v13, %v6897_v23  ;;  %v5095_v50 = vpop.f32.mrb[24].mxu1 }
 0x205   : > { %v3801_v16 = vmax.f32 %v3769_v21, 0.0  ;;  %v3732_v54 = vmul.f32 %v5428_v28, %v6897_v23  ;;  %v5319_v55 = vpop.f32.mrb[24].mxu0  ;;  %v2071_v22 = vpop.f32.mrb[25].mxu1 }
 0x206   : > { %3834 = vst [vmem:[%s6912_s8 + $0xa8] sm:$0xff] %v3802_v15  ;;  %v3772_v24 = vadd.f32 %v6902_v49, %v3733_v30  ;;  %v5429_v25 = vadd.f32 %v5319_v55, %v5095_v50  ;;  %v3632_v31 = vpop.f32.mrb[25].mxu0 }
 0x207   : > { %3833 = vst [vmem:[%s6912_s8 + $0xa0] sm:$0xff] %v3801_v16  ;;  %v3771_v35 = vadd.f32 %v6902_v49, %v3732_v54  ;;  %v5430_v17 = vadd.f32 %v3632_v31, %v2071_v22 }
 0x208   : > { %v3804_v12 = vmax.f32 %v3772_v24, 0.0  ;;  %v3735_v18 = vmul.f32 %v5429_v25, %v6897_v23  ;;  %v5098_v61 = vpop.f32.mrb[26].mxu1 }
 0x209   : > { %v3803_v47 = vmax.f32 %v3771_v35, 0.0  ;;  %v3734_v59 = vmul.f32 %v5430_v17, %v6897_v23  ;;  %v5322_v4 = vpop.f32.mrb[26].mxu0  ;;  %v2081_v48 = vpop.f32.mrb[27].mxu1 }
 0x20a   : > { %3836 = vst [vmem:[%s6912_s8 + $0xb8] sm:$0xff] %v3804_v12  ;;  %v3774_v51 = vadd.f32 %v6902_v49, %v3735_v18  ;;  %v5431_v33 = vadd.f32 %v5322_v4, %v5098_v61  ;;  %v3642_v19 = vpop.f32.mrb[27].mxu0 }
 0x20b   : > { %3835 = vst [vmem:[%s6912_s8 + $0xb0] sm:$0xff] %v3803_v47  ;;  %v3773_v34 = vadd.f32 %v6902_v49, %v3734_v59  ;;  %v5432_v37 = vadd.f32 %v3642_v19, %v2081_v48 }
 0x20c   : > { %v3806_v38 = vmax.f32 %v3774_v51, 0.0  ;;  %v3737_v20 = vmul.f32 %v5431_v33, %v6897_v23  ;;  %v5101_v40 = vpop.f32.mrb[28].mxu1 }
 0x20d   : > { %v3805_v42 = vmax.f32 %v3773_v34, 0.0  ;;  %v3736_v44 = vmul.f32 %v5432_v37, %v6897_v23  ;;  %v5325_v46 = vpop.f32.mrb[28].mxu0  ;;  %v2091_v57 = vpop.f32.mrb[29].mxu1 }
 0x20e   : > { %3838 = vst [vmem:[%s6912_s8 + $0xc8] sm:$0xff] %v3806_v38  ;;  %v3776_v7 = vadd.f32 %v6902_v49, %v3737_v20  ;;  %v5433_v36 = vadd.f32 %v5325_v46, %v5101_v40  ;;  %v3652_v0 = vpop.f32.mrb[29].mxu0 }
 0x20f   : > { %3837 = vst [vmem:[%s6912_s8 + $0xc0] sm:$0xff] %v3805_v42  ;;  %v3775_v26 = vadd.f32 %v6902_v49, %v3736_v44  ;;  %v5434_v27 = vadd.f32 %v3652_v0, %v2091_v57 }
 0x210   : > { %v3808_v41 = vmax.f32 %v3776_v7, 0.0  ;;  %v3739_v43 = vmul.f32 %v5433_v36, %v6897_v23  ;;  %v5104_v32 = vpop.f32.mrb[30].mxu1 }
 0x211   : > { %v3807_v62 = vmax.f32 %v3775_v26, 0.0  ;;  %v3738_v29 = vmul.f32 %v5434_v27, %v6897_v23  ;;  %v5328_v56 = vpop.f32.mrb[30].mxu0  ;;  %v2101_v39 = vpop.f32.mrb[31].mxu1 }
 0x212   : > { %3840 = vst [vmem:[%s6912_s8 + $0xd8] sm:$0xff] %v3808_v41  ;;  %v3778_v45 = vadd.f32 %v6902_v49, %v3739_v43  ;;  %v5435_v52 = vadd.f32 %v5328_v56, %v5104_v32  ;;  %v3662_v53 = vpop.f32.mrb[31].mxu0 }
 0x213   : > { %3839 = vst [vmem:[%s6912_s8 + $0xd0] sm:$0xff] %v3807_v62  ;;  %v3777_v58 = vadd.f32 %v6902_v49, %v3738_v29  ;;  %v5436_v60 = vadd.f32 %v3662_v53, %v2101_v39 }
 0x214   : > { %v3810_v63 = vmax.f32 %v3778_v45, 0.0  ;;  %v3741_v1 = vmul.f32 %v5435_v52, %v6897_v23 }
 0x215   : > { %v3809_v2 = vmax.f32 %v3777_v58, 0.0  ;;  %v3740_v3 = vmul.f32 %v5436_v60, %v6897_v23 }
 0x216   : > { %3842 = vst [vmem:[%s6912_s8 + $0xe8] sm:$0xff] %v3810_v63  ;;  %v3780_v5 = vadd.f32 %v6902_v49, %v3741_v1 }
 0x217   : > { %3841 = vst [vmem:[%s6912_s8 + $0xe0] sm:$0xff] %v3809_v2  ;;  %v3779_v6 = vadd.f32 %v6902_v49, %v3740_v3 }
 0x218   : > { %v3812_v8 = vmax.f32 %v3780_v5, 0.0 }
 0x219   : > { %v3811_v23 = vmax.f32 %v3779_v6, 0.0 }
 0x21a   : > { %3844 = vst [vmem:[%s6912_s8 + $0xf8] sm:$0xff] %v3812_v8 }
 0x21b   : > { %3843 = vst [vmem:[%s6912_s8 + $0xf0] sm:$0xff] %v3811_v23 }
 0x21c   : > { %5732 = shalt.err (!%p5729_p5)
}
 0x21d   : > { %s5733_s21 = scalar_lea.hbm %s7013_s13, 4096  ;;  %s5737_s5 = scalar_lea.hbm %s7071_s4, 8192 }
 0x21e   : > { %p5734_p6 = scmp.ne.s32.totalorder %s7013_s13, %s5733_s21  ;;  %p5738_p10 = scmp.lt.u32.totalorder %s7013_s13, %s7071_s4 }
 0x21f   : > { %p5739_p11 = scmp.lt.u32.totalorder %s5737_s5, %s5733_s21  ;;  %p5741_p13 = scmp.lt.u32.totalorder %s5733_s21, %s7013_s13 }
 0x220   : > { %p5735_p7 = pnand %p5734_p6, %p5867_p4 }
 0x221   : > { %p5740_p12 = por %p5739_p11, %p5738_p10 }
 0x222   : > { %p5736_p9 = pneg %p5735_p7 }
 0x223   : > { %p5742_p0 = por %p5741_p13, %p5740_p12 }
 0x225   : > { %p5743_p1 = pnand %p5742_p0, %p5736_p9 }
 0x227   : > { %5746 = shalt.err (!%p5743_p1)
}
 0x228   : > { %s5800_s8 = smov 128   ;;  %s5801_s9 = smov 8  }
 0x229   : > { %5662 = dma.vmem_to_hbm [thread:$0]  (%p5867_p4), %s7015_s10, 4096, %s7013_s13, %s7021_s18, %s5800_s8, %s5800_s8, %s5801_s9  }
 0x22a PF: > { %p5668_p2 = scmp.ge.s32.totalorder %s5797_s20, 2  ;;  %s3875_s11 = sand.u32 1, %s5777_s15  }
 0x22b   : > { %s3876_s12 = scalar_lea.sflag [#allocation3], %s3875_s11 }
 0x22c   : > { %p5665_p3 = pnand %p5668_p2, %p5874_p8 }
 0x22e   : > { %5772 = dma.done.wait (!%p5665_p3), %s3876_s12, 4096  }
 0x22f   : > { %5774 = vsyncadd (!%p5665_p3), %s3876_s12, 4294963200  ;;  %s17_s20 = sadd.s32 1, %s5797_s20   ;;  %s7197_s15 = smov %s5781_s16 }
 0x230   : > { %p14_p5 = scmp.ge.s32.totalorder %s17_s20, 4   ;;  %s7198_s16 = smov %s5785_s17 }
 0x231   : > { %s7199_s17 = smov %s5880_s28  ;;  %s7200_s18 = smov %s5793_s19 }
 0x232   : > { %s7201_s19 = smov %s7203_s23  ;;  %16 = sbr.rel (!%p14_p5) target bundleno = 4 (0x4), region = 90 }
 0x239   :  { %3881 = vsyncpa [#allocation3], 1 }
 0x23a   :  { %3883 = vsyncpa [#allocation3 + $0x1], 1 }

</bundles_post_ra>
